<compile_context>
chip_gen: v7x
topology: tpu7x:2x2x1
jax: 0.10.0
libtpu: 0.0.40
codegen_flags: <defaults>
</compile_context>

<pallas_src>
import functools

import jax
import jax.numpy as jnp
from jax.experimental import pallas as pl
from jax.experimental.pallas import tpu as pltpu


def _layernorm(x, gamma, beta, eps=1e-5):
    mu = jnp.mean(x, axis=-1, keepdims=True)
    xc = x - mu
    var = jnp.mean(xc * xc, axis=-1, keepdims=True)
    return xc * jax.lax.rsqrt(var + eps) * gamma + beta


# Row indices inside the packed per-layer vector slab.
_BQ, _BK, _BV, _BO, _G1, _BE1, _B1, _B2, _G2, _BE2 = range(10)
_N_VEC_ROWS = 10


# ---------------------------------------------------------------------------
# Pallas kernel: one grid step = (one batch block) x (one encoder layer).
# The output block (index map constant in the layer axis) is the layer carry.
# ---------------------------------------------------------------------------
def encoder_stack_kernel(x_ref, wqkv_ref, wo_ref, w1_ref, w2_ref, vecs_ref,
                         o_ref, *, n_heads, d_head):
    l = pl.program_id(1)

    @pl.when(l == 0)
    def _():
        o_ref[...] = x_ref[...]          # load the embedded sequence once

    Bt, S, D = o_ref.shape
    F = w1_ref.shape[-1]
    M = Bt * S

    h = o_ref[...].reshape(M, D)         # (M, D) f32, resident across layers

    # ---- fused QKV projection: one (M, D) @ (D, 3D) lane-dense matmul ------
    qkv = jnp.dot(h.astype(jnp.bfloat16), wqkv_ref[...],
                  preferred_element_type=jnp.float32)            # (M, 3D) f32
    q = qkv[:, :D] + vecs_ref[_BQ:_BQ + 1, :D]   # 1/sqrt(dh) folded into Wq/bq
    k = qkv[:, D:2 * D] + vecs_ref[_BK:_BK + 1, :D]
    v = qkv[:, 2 * D:] + vecs_ref[_BV:_BV + 1, :D]

    # ---- per-head attention; head merge rides an accumulating out-proj -----
    attn = jnp.zeros((M, D), jnp.float32)
    for hd in range(n_heads):
        sl = slice(hd * d_head, (hd + 1) * d_head)
        qh = q[:, sl].reshape(Bt, S, d_head).astype(jnp.bfloat16)
        kh = k[:, sl].reshape(Bt, S, d_head).astype(jnp.bfloat16)
        vh = v[:, sl].reshape(Bt, S, d_head).astype(jnp.bfloat16)

        s = jnp.einsum('bqd,bkd->bqk', qh, kh,
                       preferred_element_type=jnp.float32)       # (Bt, S, S)
        s = s - jnp.max(s, axis=-1, keepdims=True)
        p = jnp.exp(s)
        p = p * pl.reciprocal(jnp.sum(p, axis=-1, keepdims=True), approx=True)

        ctx = jnp.einsum('bqk,bkd->bqd', p.astype(jnp.bfloat16), vh,
                         preferred_element_type=jnp.float32)     # (Bt, S, dh)

        attn = attn + jnp.dot(
            ctx.reshape(M, d_head).astype(jnp.bfloat16),
            wo_ref[sl, :],                                       # (dh, D)
            preferred_element_type=jnp.float32)
    attn = attn + vecs_ref[_BO:_BO + 1, :D]

    y = _layernorm(h + attn,
                   vecs_ref[_G1:_G1 + 1, :D], vecs_ref[_BE1:_BE1 + 1, :D])

    # ---- position-wise FFN --------------------------------------------------
    ff = jnp.dot(y.astype(jnp.bfloat16), w1_ref[...],
                 preferred_element_type=jnp.float32) + vecs_ref[_B1:_B1 + 1, :F]
    ff = jnp.maximum(ff, 0.0)
    ff = jnp.dot(ff.astype(jnp.bfloat16), w2_ref[...],
                 preferred_element_type=jnp.float32) + vecs_ref[_B2:_B2 + 1, :D]

    out = _layernorm(y + ff,
                     vecs_ref[_G2:_G2 + 1, :D], vecs_ref[_BE2:_BE2 + 1, :D])
    o_ref[...] = out.reshape(Bt, S, D)   # carry to next layer / final output


def encoder_stack(x, p, n_heads, batch_block=None):
    """Apply the whole encoder-layer stack to x of shape (B, S, D)."""
    B, S, D = x.shape
    L, _, F = p["w1"].shape
    dh = D // n_heads
    assert n_heads * dh == D

    if batch_block is None:
        # keep >=2 blocks on the parallel axis so v7x's 2 TensorCores both run;
        # on single-TC chips (v5e/v6e) pass batch_block=B to fold the batch.
        batch_block = B // 2 if B >= 2 else B
    Bt = batch_block
    assert B % Bt == 0

    n_rows, vec_w = p["vecs"].shape[1:]

    return pl.pallas_call(
        functools.partial(encoder_stack_kernel, n_heads=n_heads, d_head=dh),
        out_shape=jax.ShapeDtypeStruct((B, S, D), jnp.float32),
        grid=(B // Bt, L),
        in_specs=[
            pl.BlockSpec((Bt, S, D), lambda b, l: (b, 0, 0)),
            pl.BlockSpec((None, D, 3 * D), lambda b, l: (l, 0, 0)),
            pl.BlockSpec((None, D, D), lambda b, l: (l, 0, 0)),
            pl.BlockSpec((None, D, F), lambda b, l: (l, 0, 0)),
            pl.BlockSpec((None, F, D), lambda b, l: (l, 0, 0)),
            pl.BlockSpec((None, n_rows, vec_w), lambda b, l: (l, 0, 0)),
        ],
        out_specs=pl.BlockSpec((Bt, S, D), lambda b, l: (b, 0, 0)),
        compiler_params=pltpu.CompilerParams(
            dimension_semantics=("parallel", "arbitrary")),
    )(x, p["wqkv"], p["wo"], p["w1"], p["w2"], p["vecs"])


# ---------------------------------------------------------------------------
# Parameter setup (deterministic, in-script) + embedding glue.
# ---------------------------------------------------------------------------
def sinusoid_encoding_table(n_position, d_model):
    pos = jnp.arange(n_position, dtype=jnp.float32)[:, None]
    i = jnp.arange(d_model)[None, :]
    angle = pos / jnp.power(10000.0, (2.0 * (i // 2)) / float(d_model))
    return jnp.where(i % 2 == 0, jnp.sin(angle), jnp.cos(angle)).astype(jnp.float32)


def init_params(key, n_enc_vocab, n_enc_len, d_model, d_ff, n_layers, n_heads):
    dh = d_model // n_heads
    scale = 1.0 / float(dh) ** 0.5
    W = max(d_model, d_ff)
    keys = jax.random.split(key, 1 + n_layers)
    emb = 0.02 * jax.random.normal(keys[0], (n_enc_vocab, d_model), jnp.float32)
    pos = sinusoid_encoding_table(n_enc_len, d_model)

    def pad_row(v):
        return jnp.pad(v, (0, W - v.shape[0]))

    wqkv_l, wo_l, w1_l, w2_l, vecs_l = [], [], [], [], []
    for l in range(n_layers):
        ks = jax.random.split(keys[1 + l], 6)
        wq = 0.02 * jax.random.normal(ks[0], (d_model, d_model), jnp.float32)
        wk = 0.02 * jax.random.normal(ks[1], (d_model, d_model), jnp.float32)
        wv = 0.02 * jax.random.normal(ks[2], (d_model, d_model), jnp.float32)
        wo = 0.02 * jax.random.normal(ks[3], (d_model, d_model), jnp.float32)
        w1 = 0.02 * jax.random.normal(ks[4], (d_model, d_ff), jnp.float32)
        w2 = 0.02 * jax.random.normal(ks[5], (d_ff, d_model), jnp.float32)

        # 1/sqrt(dh) folded into the Q columns (and Q bias) at init.
        wqkv_l.append(jnp.concatenate([wq * scale, wk, wv], axis=1))
        wo_l.append(wo)
        w1_l.append(w1)
        w2_l.append(w2)

        zD = jnp.zeros((d_model,), jnp.float32)
        oD = jnp.ones((d_model,), jnp.float32)
        zF = jnp.zeros((d_ff,), jnp.float32)
        vecs_l.append(jnp.stack([
            pad_row(zD * scale),   # bq (scaled)
            pad_row(zD),           # bk
            pad_row(zD),           # bv
            pad_row(zD),           # bo
            pad_row(oD),           # g1
            pad_row(zD),           # be1
            pad_row(zF),           # b1
            pad_row(zD),           # b2
            pad_row(oD),           # g2
            pad_row(zD),           # be2
        ]))

    return dict(
        emb=emb, pos=pos,
        wqkv=jnp.stack(wqkv_l).astype(jnp.bfloat16),   # (L, D, 3D)
        wo=jnp.stack(wo_l).astype(jnp.bfloat16),       # (L, D, D)
        w1=jnp.stack(w1_l).astype(jnp.bfloat16),       # (L, D, F)
        w2=jnp.stack(w2_l).astype(jnp.bfloat16),       # (L, F, D)
        vecs=jnp.stack(vecs_l),                        # (L, 10, max(D,F)) f32
    )


def self_attn_encoder(tokens, params, n_heads):
    # Glue: embedding gather + frozen sinusoidal positional embedding (plain JAX).
    B, S = tokens.shape
    x = params["emb"][tokens] + params["pos"][:S][None, :, :]
    return encoder_stack(x, params, n_heads)
    # NOTE: the reference nn.Module forward() returns the constant 1; the
    # encoder output above is the compute implied by __init__.


# ---------------------------------------------------------------------------
if __name__ == "__main__":
    n_enc_vocab = 100
    n_enc_len = 16         # sequence length (sublane-aligned)
    d_model = 128          # lane-aligned
    d_ff = 256
    n_heads = 4
    n_layers = 2           # reference default is 12; small for the demo
    batch = 4

    key = jax.random.PRNGKey(0)
    pkey, tkey = jax.random.split(key)
    params = init_params(pkey, n_enc_vocab, n_enc_len, d_model, d_ff,
                         n_layers, n_heads)
    tokens = jax.random.randint(tkey, (batch, n_enc_len), 0, n_enc_vocab,
                                dtype=jnp.int32)

    out = self_attn_encoder(tokens, params, n_heads)
    jax.block_until_ready(out)
    assert out.shape == (batch, n_enc_len, d_model)
    assert bool(jnp.all(jnp.isfinite(out)))
    print("KERNEL_OK")
</pallas_src>

<mosaic_0001>
module attributes {stable_mosaic.version = 11 : i64} {
  func.func @encoder_stack_kernel(%arg0: i32, %arg1: i32, %arg2: memref<2x16x128xf32, #tpu.memory_space<vmem>>, %arg3: memref<1x128x384xbf16, #tpu.memory_space<vmem>>, %arg4: memref<1x128x128xbf16, #tpu.memory_space<vmem>>, %arg5: memref<1x128x256xbf16, #tpu.memory_space<vmem>>, %arg6: memref<1x256x128xbf16, #tpu.memory_space<vmem>>, %arg7: memref<1x10x256xf32, #tpu.memory_space<vmem>>, %arg8: memref<2x16x128xf32, #tpu.memory_space<vmem>>) attributes {dimension_semantics = [#tpu.dimension_semantics<parallel>, #tpu.dimension_semantics<arbitrary>], iteration_bounds = array<i64: 2, 2>, scalar_prefetch = 0 : i64, scratch_operands = 0 : i64, tpu.core_type = #tpu.core_type<tc>, window_params = [{transform_indices = @transform_0, window_bounds = array<i64: 2, 16, 128>}, {transform_indices = @transform_1, window_bounds = array<i64: 1, 128, 384>}, {transform_indices = @transform_2, window_bounds = array<i64: 1, 128, 128>}, {transform_indices = @transform_3, window_bounds = array<i64: 1, 128, 256>}, {transform_indices = @transform_4, window_bounds = array<i64: 1, 256, 128>}, {transform_indices = @transform_5, window_bounds = array<i64: 1, 10, 256>}, {transform_indices = @transform_6, window_bounds = array<i64: 2, 16, 128>}]} {
    %c0_i32 = arith.constant 0 : i32
    %0 = arith.cmpi eq, %arg1, %c0_i32 : i32
    %1 = arith.extui %0 : i1 to i32
    %c0_i32_0 = arith.constant 0 : i32
    %2 = arith.cmpi ne, %1, %c0_i32_0 : i32
    scf.if %2 {
      %c0_79 = arith.constant 0 : index
      %c0_80 = arith.constant 0 : index
      %c0_81 = arith.constant 0 : index
      %211 = vector.load %arg2[%c0_79, %c0_80, %c0_81] : memref<2x16x128xf32, #tpu.memory_space<vmem>>, vector<2x16x128xf32>
      %c0_82 = arith.constant 0 : index
      %c0_83 = arith.constant 0 : index
      %c0_84 = arith.constant 0 : index
      %212 = vector.load %arg8[%c0_82, %c0_83, %c0_84] : memref<2x16x128xf32, #tpu.memory_space<vmem>>, vector<2x16x128xf32>
      tpu.vector_store %arg8[%c0_82, %c0_83, %c0_84], %211 {strides = array<i32>} : memref<2x16x128xf32, #tpu.memory_space<vmem>>, vector<2x16x128xf32>,
    } else {
    }
    %c0 = arith.constant 0 : index
    %c0_1 = arith.constant 0 : index
    %c0_2 = arith.constant 0 : index
    %3 = vector.load %arg8[%c0, %c0_1, %c0_2] : memref<2x16x128xf32, #tpu.memory_space<vmem>>, vector<2x16x128xf32>
    %4 = vector.shape_cast %3 : vector<2x16x128xf32> to vector<32x128xf32>
    %5 = arith.truncf %4 : vector<32x128xf32> to vector<32x128xbf16>
    %c0_3 = arith.constant 0 : index
    %c0_4 = arith.constant 0 : index
    %c0_5 = arith.constant 0 : index
    %6 = vector.load %arg3[%c0_3, %c0_4, %c0_5] : memref<1x128x384xbf16, #tpu.memory_space<vmem>>, vector<1x128x384xbf16>
    %7 = vector.shape_cast %6 : vector<1x128x384xbf16> to vector<128x384xbf16>
    %cst = arith.constant dense<0.000000e+00> : vector<32x384xf32>
    %8 = tpu.matmul %5, %7, %cst {dimension_numbers = #tpu.dot_dimension_numbers<[1], [0], [0], [1], [0, 0, 1, 1], [], []>} : vector<32x128xbf16>, vector<128x384xbf16>, vector<32x384xf32> -> vector<32x384xf32>
    %9 = vector.extract_strided_slice %8 {offsets = [0, 0], sizes = [32, 128], strides = [1, 1]} : vector<32x384xf32> to vector<32x128xf32>
    %c0_6 = arith.constant 0 : index
    %c0_7 = arith.constant 0 : index
    %c0_8 = arith.constant 0 : index
    %10 = vector.load %arg7[%c0_6, %c0_7, %c0_8] : memref<1x10x256xf32, #tpu.memory_space<vmem>>, vector<1x1x128xf32>
    %11 = vector.shape_cast %10 : vector<1x1x128xf32> to vector<1x128xf32>
    %12 = vector.broadcast %11 : vector<1x128xf32> to vector<32x128xf32>
    %13 = arith.addf %9, %12 : vector<32x128xf32>
    %14 = vector.extract_strided_slice %8 {offsets = [0, 128], sizes = [32, 128], strides = [1, 1]} : vector<32x384xf32> to vector<32x128xf32>
    %c0_9 = arith.constant 0 : index
    %c1 = arith.constant 1 : index
    %c0_10 = arith.constant 0 : index
    %15 = vector.load %arg7[%c0_9, %c1, %c0_10] : memref<1x10x256xf32, #tpu.memory_space<vmem>>, vector<1x1x128xf32>
    %16 = vector.shape_cast %15 : vector<1x1x128xf32> to vector<1x128xf32>
    %17 = vector.broadcast %16 : vector<1x128xf32> to vector<32x128xf32>
    %18 = arith.addf %14, %17 : vector<32x128xf32>
    %19 = vector.extract_strided_slice %8 {offsets = [0, 256], sizes = [32, 128], strides = [1, 1]} : vector<32x384xf32> to vector<32x128xf32>
    %c0_11 = arith.constant 0 : index
    %c2 = arith.constant 2 : index
    %c0_12 = arith.constant 0 : index
    %20 = vector.load %arg7[%c0_11, %c2, %c0_12] : memref<1x10x256xf32, #tpu.memory_space<vmem>>, vector<1x1x128xf32>
    %21 = vector.shape_cast %20 : vector<1x1x128xf32> to vector<1x128xf32>
    %22 = vector.broadcast %21 : vector<1x128xf32> to vector<32x128xf32>
    %23 = arith.addf %19, %22 : vector<32x128xf32>
    %cst_13 = arith.constant 0.000000e+00 : f32
    %24 = vector.broadcast %cst_13 : f32 to vector<32x128xf32>
    %25 = vector.extract_strided_slice %13 {offsets = [0, 0], sizes = [32, 32], strides = [1, 1]} : vector<32x128xf32> to vector<32x32xf32>
    %26 = vector.shape_cast %25 : vector<32x32xf32> to vector<2x16x32xf32>
    %27 = arith.truncf %26 : vector<2x16x32xf32> to vector<2x16x32xbf16>
    %28 = vector.extract_strided_slice %18 {offsets = [0, 0], sizes = [32, 32], strides = [1, 1]} : vector<32x128xf32> to vector<32x32xf32>
    %29 = vector.shape_cast %28 : vector<32x32xf32> to vector<2x16x32xf32>
    %30 = arith.truncf %29 : vector<2x16x32xf32> to vector<2x16x32xbf16>
    %31 = vector.extract_strided_slice %23 {offsets = [0, 0], sizes = [32, 32], strides = [1, 1]} : vector<32x128xf32> to vector<32x32xf32>
    %32 = vector.shape_cast %31 : vector<32x32xf32> to vector<2x16x32xf32>
    %33 = arith.truncf %32 : vector<2x16x32xf32> to vector<2x16x32xbf16>
    "tpu.trace_start"() <{level = 10 : i32, message = "bqd,bkd->bqk"}> : () -> ()
    %cst_14 = arith.constant dense<0.000000e+00> : vector<2x16x16xf32>
    %34 = tpu.matmul %27, %30, %cst_14 {dimension_numbers = #tpu.dot_dimension_numbers<[2], [2], [1], [1], [0, 0, 0, 1, 1, 1], [0], [0]>} : vector<2x16x32xbf16>, vector<2x16x32xbf16>, vector<2x16x16xf32> -> vector<2x16x16xf32>
    "tpu.trace_stop"() : () -> ()
    %cst_15 = arith.constant dense<0xFF800000> : vector<2x16xf32>
    %35 = vector.multi_reduction <maximumf>, %34, %cst_15 [2] : vector<2x16x16xf32> to vector<2x16xf32>
    %36 = vector.shape_cast %35 : vector<2x16xf32> to vector<2x16x1xf32>
    %37 = vector.broadcast %36 : vector<2x16x1xf32> to vector<2x16x16xf32>
    %38 = arith.subf %34, %37 : vector<2x16x16xf32>
    %39 = math.exp %38 : vector<2x16x16xf32>
    %cst_16 = arith.constant dense<0.000000e+00> : vector<2x16xf32>
    %40 = vector.multi_reduction <add>, %39, %cst_16 [2] : vector<2x16x16xf32> to vector<2x16xf32>
    %41 = vector.shape_cast %40 : vector<2x16xf32> to vector<2x16x1xf32>
    %42 = tpu.reciprocal %41 {approx = true} : vector<2x16x1xf32> -> vector<2x16x1xf32>
    %43 = vector.broadcast %42 : vector<2x16x1xf32> to vector<2x16x16xf32>
    %44 = arith.mulf %39, %43 : vector<2x16x16xf32>
    %45 = arith.truncf %44 : vector<2x16x16xf32> to vector<2x16x16xbf16>
    "tpu.trace_start"() <{level = 10 : i32, message = "bqk,bkd->bqd"}> : () -> ()
    %cst_17 = arith.constant dense<0.000000e+00> : vector<2x16x32xf32>
    %46 = tpu.matmul %45, %33, %cst_17 {dimension_numbers = #tpu.dot_dimension_numbers<[2], [1], [1], [2], [0, 0, 0, 1, 1, 2], [0], [0]>} : vector<2x16x16xbf16>, vector<2x16x32xbf16>, vector<2x16x32xf32> -> vector<2x16x32xf32>
    "tpu.trace_stop"() : () -> ()
    %47 = vector.shape_cast %46 : vector<2x16x32xf32> to vector<32x32xf32>
    %48 = arith.truncf %47 : vector<32x32xf32> to vector<32x32xbf16>
    %c0_18 = arith.constant 0 : index
    %c0_19 = arith.constant 0 : index
    %c0_20 = arith.constant 0 : index
    %49 = vector.load %arg4[%c0_18, %c0_19, %c0_20] : memref<1x128x128xbf16, #tpu.memory_space<vmem>>, vector<1x32x128xbf16>
    %50 = vector.shape_cast %49 : vector<1x32x128xbf16> to vector<32x128xbf16>
    %cst_21 = arith.constant dense<0.000000e+00> : vector<32x128xf32>
    %51 = tpu.matmul %48, %50, %cst_21 {dimension_numbers = #tpu.dot_dimension_numbers<[1], [0], [0], [1], [0, 0, 1, 1], [], []>} : vector<32x32xbf16>, vector<32x128xbf16>, vector<32x128xf32> -> vector<32x128xf32>
    %52 = arith.addf %24, %51 : vector<32x128xf32>
    %53 = vector.extract_strided_slice %13 {offsets = [0, 32], sizes = [32, 32], strides = [1, 1]} : vector<32x128xf32> to vector<32x32xf32>
    %54 = vector.shape_cast %53 : vector<32x32xf32> to vector<2x16x32xf32>
    %55 = arith.truncf %54 : vector<2x16x32xf32> to vector<2x16x32xbf16>
    %56 = vector.extract_strided_slice %18 {offsets = [0, 32], sizes = [32, 32], strides = [1, 1]} : vector<32x128xf32> to vector<32x32xf32>
    %57 = vector.shape_cast %56 : vector<32x32xf32> to vector<2x16x32xf32>
    %58 = arith.truncf %57 : vector<2x16x32xf32> to vector<2x16x32xbf16>
    %59 = vector.extract_strided_slice %23 {offsets = [0, 32], sizes = [32, 32], strides = [1, 1]} : vector<32x128xf32> to vector<32x32xf32>
    %60 = vector.shape_cast %59 : vector<32x32xf32> to vector<2x16x32xf32>
    %61 = arith.truncf %60 : vector<2x16x32xf32> to vector<2x16x32xbf16>
    "tpu.trace_start"() <{level = 10 : i32, message = "bqd,bkd->bqk"}> : () -> ()
    %cst_22 = arith.constant dense<0.000000e+00> : vector<2x16x16xf32>
    %62 = tpu.matmul %55, %58, %cst_22 {dimension_numbers = #tpu.dot_dimension_numbers<[2], [2], [1], [1], [0, 0, 0, 1, 1, 1], [0], [0]>} : vector<2x16x32xbf16>, vector<2x16x32xbf16>, vector<2x16x16xf32> -> vector<2x16x16xf32>
    "tpu.trace_stop"() : () -> ()
    %cst_23 = arith.constant dense<0xFF800000> : vector<2x16xf32>
    %63 = vector.multi_reduction <maximumf>, %62, %cst_23 [2] : vector<2x16x16xf32> to vector<2x16xf32>
    %64 = vector.shape_cast %63 : vector<2x16xf32> to vector<2x16x1xf32>
    %65 = vector.broadcast %64 : vector<2x16x1xf32> to vector<2x16x16xf32>
    %66 = arith.subf %62, %65 : vector<2x16x16xf32>
    %67 = math.exp %66 : vector<2x16x16xf32>
    %cst_24 = arith.constant dense<0.000000e+00> : vector<2x16xf32>
    %68 = vector.multi_reduction <add>, %67, %cst_24 [2] : vector<2x16x16xf32> to vector<2x16xf32>
    %69 = vector.shape_cast %68 : vector<2x16xf32> to vector<2x16x1xf32>
    %70 = tpu.reciprocal %69 {approx = true} : vector<2x16x1xf32> -> vector<2x16x1xf32>
    %71 = vector.broadcast %70 : vector<2x16x1xf32> to vector<2x16x16xf32>
    %72 = arith.mulf %67, %71 : vector<2x16x16xf32>
    %73 = arith.truncf %72 : vector<2x16x16xf32> to vector<2x16x16xbf16>
    "tpu.trace_start"() <{level = 10 : i32, message = "bqk,bkd->bqd"}> : () -> ()
    %cst_25 = arith.constant dense<0.000000e+00> : vector<2x16x32xf32>
    %74 = tpu.matmul %73, %61, %cst_25 {dimension_numbers = #tpu.dot_dimension_numbers<[2], [1], [1], [2], [0, 0, 0, 1, 1, 2], [0], [0]>} : vector<2x16x16xbf16>, vector<2x16x32xbf16>, vector<2x16x32xf32> -> vector<2x16x32xf32>
    "tpu.trace_stop"() : () -> ()
    %75 = vector.shape_cast %74 : vector<2x16x32xf32> to vector<32x32xf32>
    %76 = arith.truncf %75 : vector<32x32xf32> to vector<32x32xbf16>
    %c0_26 = arith.constant 0 : index
    %c32 = arith.constant 32 : index
    %c0_27 = arith.constant 0 : index
    %77 = vector.load %arg4[%c0_26, %c32, %c0_27] : memref<1x128x128xbf16, #tpu.memory_space<vmem>>, vector<1x32x128xbf16>
    %78 = vector.shape_cast %77 : vector<1x32x128xbf16> to vector<32x128xbf16>
    %cst_28 = arith.constant dense<0.000000e+00> : vector<32x128xf32>
    %79 = tpu.matmul %76, %78, %cst_28 {dimension_numbers = #tpu.dot_dimension_numbers<[1], [0], [0], [1], [0, 0, 1, 1], [], []>} : vector<32x32xbf16>, vector<32x128xbf16>, vector<32x128xf32> -> vector<32x128xf32>
    %80 = arith.addf %52, %79 : vector<32x128xf32>
    %81 = vector.extract_strided_slice %13 {offsets = [0, 64], sizes = [32, 32], strides = [1, 1]} : vector<32x128xf32> to vector<32x32xf32>
    %82 = vector.shape_cast %81 : vector<32x32xf32> to vector<2x16x32xf32>
    %83 = arith.truncf %82 : vector<2x16x32xf32> to vector<2x16x32xbf16>
    %84 = vector.extract_strided_slice %18 {offsets = [0, 64], sizes = [32, 32], strides = [1, 1]} : vector<32x128xf32> to vector<32x32xf32>
    %85 = vector.shape_cast %84 : vector<32x32xf32> to vector<2x16x32xf32>
    %86 = arith.truncf %85 : vector<2x16x32xf32> to vector<2x16x32xbf16>
    %87 = vector.extract_strided_slice %23 {offsets = [0, 64], sizes = [32, 32], strides = [1, 1]} : vector<32x128xf32> to vector<32x32xf32>
    %88 = vector.shape_cast %87 : vector<32x32xf32> to vector<2x16x32xf32>
    %89 = arith.truncf %88 : vector<2x16x32xf32> to vector<2x16x32xbf16>
    "tpu.trace_start"() <{level = 10 : i32, message = "bqd,bkd->bqk"}> : () -> ()
    %cst_29 = arith.constant dense<0.000000e+00> : vector<2x16x16xf32>
    %90 = tpu.matmul %83, %86, %cst_29 {dimension_numbers = #tpu.dot_dimension_numbers<[2], [2], [1], [1], [0, 0, 0, 1, 1, 1], [0], [0]>} : vector<2x16x32xbf16>, vector<2x16x32xbf16>, vector<2x16x16xf32> -> vector<2x16x16xf32>
    "tpu.trace_stop"() : () -> ()
    %cst_30 = arith.constant dense<0xFF800000> : vector<2x16xf32>
    %91 = vector.multi_reduction <maximumf>, %90, %cst_30 [2] : vector<2x16x16xf32> to vector<2x16xf32>
    %92 = vector.shape_cast %91 : vector<2x16xf32> to vector<2x16x1xf32>
    %93 = vector.broadcast %92 : vector<2x16x1xf32> to vector<2x16x16xf32>
    %94 = arith.subf %90, %93 : vector<2x16x16xf32>
    %95 = math.exp %94 : vector<2x16x16xf32>
    %cst_31 = arith.constant dense<0.000000e+00> : vector<2x16xf32>
    %96 = vector.multi_reduction <add>, %95, %cst_31 [2] : vector<2x16x16xf32> to vector<2x16xf32>
    %97 = vector.shape_cast %96 : vector<2x16xf32> to vector<2x16x1xf32>
    %98 = tpu.reciprocal %97 {approx = true} : vector<2x16x1xf32> -> vector<2x16x1xf32>
    %99 = vector.broadcast %98 : vector<2x16x1xf32> to vector<2x16x16xf32>
    %100 = arith.mulf %95, %99 : vector<2x16x16xf32>
    %101 = arith.truncf %100 : vector<2x16x16xf32> to vector<2x16x16xbf16>
    "tpu.trace_start"() <{level = 10 : i32, message = "bqk,bkd->bqd"}> : () -> ()
    %cst_32 = arith.constant dense<0.000000e+00> : vector<2x16x32xf32>
    %102 = tpu.matmul %101, %89, %cst_32 {dimension_numbers = #tpu.dot_dimension_numbers<[2], [1], [1], [2], [0, 0, 0, 1, 1, 2], [0], [0]>} : vector<2x16x16xbf16>, vector<2x16x32xbf16>, vector<2x16x32xf32> -> vector<2x16x32xf32>
    "tpu.trace_stop"() : () -> ()
    %103 = vector.shape_cast %102 : vector<2x16x32xf32> to vector<32x32xf32>
    %104 = arith.truncf %103 : vector<32x32xf32> to vector<32x32xbf16>
    %c0_33 = arith.constant 0 : index
    %c64 = arith.constant 64 : index
    %c0_34 = arith.constant 0 : index
    %105 = vector.load %arg4[%c0_33, %c64, %c0_34] : memref<1x128x128xbf16, #tpu.memory_space<vmem>>, vector<1x32x128xbf16>
    %106 = vector.shape_cast %105 : vector<1x32x128xbf16> to vector<32x128xbf16>
    %cst_35 = arith.constant dense<0.000000e+00> : vector<32x128xf32>
    %107 = tpu.matmul %104, %106, %cst_35 {dimension_numbers = #tpu.dot_dimension_numbers<[1], [0], [0], [1], [0, 0, 1, 1], [], []>} : vector<32x32xbf16>, vector<32x128xbf16>, vector<32x128xf32> -> vector<32x128xf32>
    %108 = arith.addf %80, %107 : vector<32x128xf32>
    %109 = vector.extract_strided_slice %13 {offsets = [0, 96], sizes = [32, 32], strides = [1, 1]} : vector<32x128xf32> to vector<32x32xf32>
    %110 = vector.shape_cast %109 : vector<32x32xf32> to vector<2x16x32xf32>
    %111 = arith.truncf %110 : vector<2x16x32xf32> to vector<2x16x32xbf16>
    %112 = vector.extract_strided_slice %18 {offsets = [0, 96], sizes = [32, 32], strides = [1, 1]} : vector<32x128xf32> to vector<32x32xf32>
    %113 = vector.shape_cast %112 : vector<32x32xf32> to vector<2x16x32xf32>
    %114 = arith.truncf %113 : vector<2x16x32xf32> to vector<2x16x32xbf16>
    %115 = vector.extract_strided_slice %23 {offsets = [0, 96], sizes = [32, 32], strides = [1, 1]} : vector<32x128xf32> to vector<32x32xf32>
    %116 = vector.shape_cast %115 : vector<32x32xf32> to vector<2x16x32xf32>
    %117 = arith.truncf %116 : vector<2x16x32xf32> to vector<2x16x32xbf16>
    "tpu.trace_start"() <{level = 10 : i32, message = "bqd,bkd->bqk"}> : () -> ()
    %cst_36 = arith.constant dense<0.000000e+00> : vector<2x16x16xf32>
    %118 = tpu.matmul %111, %114, %cst_36 {dimension_numbers = #tpu.dot_dimension_numbers<[2], [2], [1], [1], [0, 0, 0, 1, 1, 1], [0], [0]>} : vector<2x16x32xbf16>, vector<2x16x32xbf16>, vector<2x16x16xf32> -> vector<2x16x16xf32>
    "tpu.trace_stop"() : () -> ()
    %cst_37 = arith.constant dense<0xFF800000> : vector<2x16xf32>
    %119 = vector.multi_reduction <maximumf>, %118, %cst_37 [2] : vector<2x16x16xf32> to vector<2x16xf32>
    %120 = vector.shape_cast %119 : vector<2x16xf32> to vector<2x16x1xf32>
    %121 = vector.broadcast %120 : vector<2x16x1xf32> to vector<2x16x16xf32>
    %122 = arith.subf %118, %121 : vector<2x16x16xf32>
    %123 = math.exp %122 : vector<2x16x16xf32>
    %cst_38 = arith.constant dense<0.000000e+00> : vector<2x16xf32>
    %124 = vector.multi_reduction <add>, %123, %cst_38 [2] : vector<2x16x16xf32> to vector<2x16xf32>
    %125 = vector.shape_cast %124 : vector<2x16xf32> to vector<2x16x1xf32>
    %126 = tpu.reciprocal %125 {approx = true} : vector<2x16x1xf32> -> vector<2x16x1xf32>
    %127 = vector.broadcast %126 : vector<2x16x1xf32> to vector<2x16x16xf32>
    %128 = arith.mulf %123, %127 : vector<2x16x16xf32>
    %129 = arith.truncf %128 : vector<2x16x16xf32> to vector<2x16x16xbf16>
    "tpu.trace_start"() <{level = 10 : i32, message = "bqk,bkd->bqd"}> : () -> ()
    %cst_39 = arith.constant dense<0.000000e+00> : vector<2x16x32xf32>
    %130 = tpu.matmul %129, %117, %cst_39 {dimension_numbers = #tpu.dot_dimension_numbers<[2], [1], [1], [2], [0, 0, 0, 1, 1, 2], [0], [0]>} : vector<2x16x16xbf16>, vector<2x16x32xbf16>, vector<2x16x32xf32> -> vector<2x16x32xf32>
    "tpu.trace_stop"() : () -> ()
    %131 = vector.shape_cast %130 : vector<2x16x32xf32> to vector<32x32xf32>
    %132 = arith.truncf %131 : vector<32x32xf32> to vector<32x32xbf16>
    %c0_40 = arith.constant 0 : index
    %c96 = arith.constant 96 : index
    %c0_41 = arith.constant 0 : index
    %133 = vector.load %arg4[%c0_40, %c96, %c0_41] : memref<1x128x128xbf16, #tpu.memory_space<vmem>>, vector<1x32x128xbf16>
    %134 = vector.shape_cast %133 : vector<1x32x128xbf16> to vector<32x128xbf16>
    %cst_42 = arith.constant dense<0.000000e+00> : vector<32x128xf32>
    %135 = tpu.matmul %132, %134, %cst_42 {dimension_numbers = #tpu.dot_dimension_numbers<[1], [0], [0], [1], [0, 0, 1, 1], [], []>} : vector<32x32xbf16>, vector<32x128xbf16>, vector<32x128xf32> -> vector<32x128xf32>
    %136 = arith.addf %108, %135 : vector<32x128xf32>
    %c0_43 = arith.constant 0 : index
    %c3 = arith.constant 3 : index
    %c0_44 = arith.constant 0 : index
    %137 = vector.load %arg7[%c0_43, %c3, %c0_44] : memref<1x10x256xf32, #tpu.memory_space<vmem>>, vector<1x1x128xf32>
    %138 = vector.shape_cast %137 : vector<1x1x128xf32> to vector<1x128xf32>
    %139 = vector.broadcast %138 : vector<1x128xf32> to vector<32x128xf32>
    %140 = arith.addf %136, %139 : vector<32x128xf32>
    %141 = arith.addf %4, %140 : vector<32x128xf32>
    %c0_45 = arith.constant 0 : index
    %c4 = arith.constant 4 : index
    %c0_46 = arith.constant 0 : index
    %142 = vector.load %arg7[%c0_45, %c4, %c0_46] : memref<1x10x256xf32, #tpu.memory_space<vmem>>, vector<1x1x128xf32>
    %143 = vector.shape_cast %142 : vector<1x1x128xf32> to vector<1x128xf32>
    %c0_47 = arith.constant 0 : index
    %c5 = arith.constant 5 : index
    %c0_48 = arith.constant 0 : index
    %144 = vector.load %arg7[%c0_47, %c5, %c0_48] : memref<1x10x256xf32, #tpu.memory_space<vmem>>, vector<1x1x128xf32>
    %145 = vector.shape_cast %144 : vector<1x1x128xf32> to vector<1x128xf32>
    %cst_49 = arith.constant dense<0.000000e+00> : vector<32xf32>
    %146 = vector.multi_reduction <add>, %141, %cst_49 [1] : vector<32x128xf32> to vector<32xf32>
    %147 = vector.shape_cast %146 : vector<32xf32> to vector<32x1xf32>
    %cst_50 = arith.constant 1.280000e+02 : f32
    %148 = vector.broadcast %cst_50 : f32 to vector<32x1xf32>
    %149 = arith.divf %147, %148 : vector<32x1xf32>
    %150 = vector.broadcast %149 : vector<32x1xf32> to vector<32x128xf32>
    %151 = arith.subf %141, %150 : vector<32x128xf32>
    %152 = arith.mulf %151, %151 : vector<32x128xf32>
    %cst_51 = arith.constant dense<0.000000e+00> : vector<32xf32>
    %153 = vector.multi_reduction <add>, %152, %cst_51 [1] : vector<32x128xf32> to vector<32xf32>
    %154 = vector.shape_cast %153 : vector<32xf32> to vector<32x1xf32>
    %cst_52 = arith.constant 1.280000e+02 : f32
    %155 = vector.broadcast %cst_52 : f32 to vector<32x1xf32>
    %156 = arith.divf %154, %155 : vector<32x1xf32>
    %cst_53 = arith.constant 9.99999974E-6 : f32
    %157 = vector.broadcast %cst_53 : f32 to vector<32x1xf32>
    %158 = arith.addf %156, %157 : vector<32x1xf32>
    %159 = math.rsqrt %158 : vector<32x1xf32>
    %160 = vector.broadcast %159 : vector<32x1xf32> to vector<32x128xf32>
    %161 = arith.mulf %151, %160 : vector<32x128xf32>
    %162 = vector.broadcast %143 : vector<1x128xf32> to vector<32x128xf32>
    %163 = arith.mulf %161, %162 : vector<32x128xf32>
    %164 = vector.broadcast %145 : vector<1x128xf32> to vector<32x128xf32>
    %165 = arith.addf %163, %164 : vector<32x128xf32>
    %166 = arith.truncf %165 : vector<32x128xf32> to vector<32x128xbf16>
    %c0_54 = arith.constant 0 : index
    %c0_55 = arith.constant 0 : index
    %c0_56 = arith.constant 0 : index
    %167 = vector.load %arg5[%c0_54, %c0_55, %c0_56] : memref<1x128x256xbf16, #tpu.memory_space<vmem>>, vector<1x128x256xbf16>
    %168 = vector.shape_cast %167 : vector<1x128x256xbf16> to vector<128x256xbf16>
    %cst_57 = arith.constant dense<0.000000e+00> : vector<32x256xf32>
    %169 = tpu.matmul %166, %168, %cst_57 {dimension_numbers = #tpu.dot_dimension_numbers<[1], [0], [0], [1], [0, 0, 1, 1], [], []>} : vector<32x128xbf16>, vector<128x256xbf16>, vector<32x256xf32> -> vector<32x256xf32>
    %c0_58 = arith.constant 0 : index
    %c6 = arith.constant 6 : index
    %c0_59 = arith.constant 0 : index
    %170 = vector.load %arg7[%c0_58, %c6, %c0_59] : memref<1x10x256xf32, #tpu.memory_space<vmem>>, vector<1x1x256xf32>
    %171 = vector.shape_cast %170 : vector<1x1x256xf32> to vector<1x256xf32>
    %172 = vector.broadcast %171 : vector<1x256xf32> to vector<32x256xf32>
    %173 = arith.addf %169, %172 : vector<32x256xf32>
    %cst_60 = arith.constant 0.000000e+00 : f32
    %174 = vector.broadcast %cst_60 : f32 to vector<32x256xf32>
    %175 = arith.maximumf %173, %174 : vector<32x256xf32>
    %176 = arith.truncf %175 : vector<32x256xf32> to vector<32x256xbf16>
    %c0_61 = arith.constant 0 : index
    %c0_62 = arith.constant 0 : index
    %c0_63 = arith.constant 0 : index
    %177 = vector.load %arg6[%c0_61, %c0_62, %c0_63] : memref<1x256x128xbf16, #tpu.memory_space<vmem>>, vector<1x256x128xbf16>
    %178 = vector.shape_cast %177 : vector<1x256x128xbf16> to vector<256x128xbf16>
    %cst_64 = arith.constant dense<0.000000e+00> : vector<32x128xf32>
    %179 = tpu.matmul %176, %178, %cst_64 {dimension_numbers = #tpu.dot_dimension_numbers<[1], [0], [0], [1], [0, 0, 1, 1], [], []>} : vector<32x256xbf16>, vector<256x128xbf16>, vector<32x128xf32> -> vector<32x128xf32>
    %c0_65 = arith.constant 0 : index
    %c7 = arith.constant 7 : index
    %c0_66 = arith.constant 0 : index
    %180 = vector.load %arg7[%c0_65, %c7, %c0_66] : memref<1x10x256xf32, #tpu.memory_space<vmem>>, vector<1x1x128xf32>
    %181 = vector.shape_cast %180 : vector<1x1x128xf32> to vector<1x128xf32>
    %182 = vector.broadcast %181 : vector<1x128xf32> to vector<32x128xf32>
    %183 = arith.addf %179, %182 : vector<32x128xf32>
    %184 = arith.addf %165, %183 : vector<32x128xf32>
    %c0_67 = arith.constant 0 : index
    %c8 = arith.constant 8 : index
    %c0_68 = arith.constant 0 : index
    %185 = vector.load %arg7[%c0_67, %c8, %c0_68] : memref<1x10x256xf32, #tpu.memory_space<vmem>>, vector<1x1x128xf32>
    %186 = vector.shape_cast %185 : vector<1x1x128xf32> to vector<1x128xf32>
    %c0_69 = arith.constant 0 : index
    %c9 = arith.constant 9 : index
    %c0_70 = arith.constant 0 : index
    %187 = vector.load %arg7[%c0_69, %c9, %c0_70] : memref<1x10x256xf32, #tpu.memory_space<vmem>>, vector<1x1x128xf32>
    %188 = vector.shape_cast %187 : vector<1x1x128xf32> to vector<1x128xf32>
    %cst_71 = arith.constant dense<0.000000e+00> : vector<32xf32>
    %189 = vector.multi_reduction <add>, %184, %cst_71 [1] : vector<32x128xf32> to vector<32xf32>
    %190 = vector.shape_cast %189 : vector<32xf32> to vector<32x1xf32>
    %cst_72 = arith.constant 1.280000e+02 : f32
    %191 = vector.broadcast %cst_72 : f32 to vector<32x1xf32>
    %192 = arith.divf %190, %191 : vector<32x1xf32>
    %193 = vector.broadcast %192 : vector<32x1xf32> to vector<32x128xf32>
    %194 = arith.subf %184, %193 : vector<32x128xf32>
    %195 = arith.mulf %194, %194 : vector<32x128xf32>
    %cst_73 = arith.constant dense<0.000000e+00> : vector<32xf32>
    %196 = vector.multi_reduction <add>, %195, %cst_73 [1] : vector<32x128xf32> to vector<32xf32>
    %197 = vector.shape_cast %196 : vector<32xf32> to vector<32x1xf32>
    %cst_74 = arith.constant 1.280000e+02 : f32
    %198 = vector.broadcast %cst_74 : f32 to vector<32x1xf32>
    %199 = arith.divf %197, %198 : vector<32x1xf32>
    %cst_75 = arith.constant 9.99999974E-6 : f32
    %200 = vector.broadcast %cst_75 : f32 to vector<32x1xf32>
    %201 = arith.addf %199, %200 : vector<32x1xf32>
    %202 = math.rsqrt %201 : vector<32x1xf32>
    %203 = vector.broadcast %202 : vector<32x1xf32> to vector<32x128xf32>
    %204 = arith.mulf %194, %203 : vector<32x128xf32>
    %205 = vector.broadcast %186 : vector<1x128xf32> to vector<32x128xf32>
    %206 = arith.mulf %204, %205 : vector<32x128xf32>
    %207 = vector.broadcast %188 : vector<1x128xf32> to vector<32x128xf32>
    %208 = arith.addf %206, %207 : vector<32x128xf32>
    %209 = vector.shape_cast %208 : vector<32x128xf32> to vector<2x16x128xf32>
    %c0_76 = arith.constant 0 : index
    %c0_77 = arith.constant 0 : index
    %c0_78 = arith.constant 0 : index
    %210 = vector.load %arg8[%c0_76, %c0_77, %c0_78] : memref<2x16x128xf32, #tpu.memory_space<vmem>>, vector<2x16x128xf32>
    tpu.vector_store %arg8[%c0_76, %c0_77, %c0_78], %209 {strides = array<i32>} : memref<2x16x128xf32, #tpu.memory_space<vmem>>, vector<2x16x128xf32>,
    return
  }
  func.func @transform_0(%arg0: i32, %arg1: i32) -> (i32, i32, i32) {
    %c0_i32 = arith.constant 0 : i32
    %c0_i32_0 = arith.constant 0 : i32
    %c0_i32_1 = arith.constant 0 : i32
    return %arg0, %c0_i32, %c0_i32_0 : i32, i32, i32
  }
  func.func @transform_1(%arg0: i32, %arg1: i32) -> (i32, i32, i32) {
    %c0_i32 = arith.constant 0 : i32
    %c0_i32_0 = arith.constant 0 : i32
    %c0_i32_1 = arith.constant 0 : i32
    return %arg1, %c0_i32, %c0_i32_0 : i32, i32, i32
  }
  func.func @transform_2(%arg0: i32, %arg1: i32) -> (i32, i32, i32) {
    %c0_i32 = arith.constant 0 : i32
    %c0_i32_0 = arith.constant 0 : i32
    %c0_i32_1 = arith.constant 0 : i32
    return %arg1, %c0_i32, %c0_i32_0 : i32, i32, i32
  }
  func.func @transform_3(%arg0: i32, %arg1: i32) -> (i32, i32, i32) {
    %c0_i32 = arith.constant 0 : i32
    %c0_i32_0 = arith.constant 0 : i32
    %c0_i32_1 = arith.constant 0 : i32
    return %arg1, %c0_i32, %c0_i32_0 : i32, i32, i32
  }
  func.func @transform_4(%arg0: i32, %arg1: i32) -> (i32, i32, i32) {
    %c0_i32 = arith.constant 0 : i32
    %c0_i32_0 = arith.constant 0 : i32
    %c0_i32_1 = arith.constant 0 : i32
    return %arg1, %c0_i32, %c0_i32_0 : i32, i32, i32
  }
  func.func @transform_5(%arg0: i32, %arg1: i32) -> (i32, i32, i32) {
    %c0_i32 = arith.constant 0 : i32
    %c0_i32_0 = arith.constant 0 : i32
    %c0_i32_1 = arith.constant 0 : i32
    return %arg1, %c0_i32, %c0_i32_0 : i32, i32, i32
  }
  func.func @transform_6(%arg0: i32, %arg1: i32) -> (i32, i32, i32) {
    %c0_i32 = arith.constant 0 : i32
    %c0_i32_0 = arith.constant 0 : i32
    %c0_i32_1 = arith.constant 0 : i32
    return %arg0, %c0_i32, %c0_i32_0 : i32, i32, i32
  }
}

</mosaic_0001>

<bundles_post_ra>
// kernel: tpu_custom_call.1
= control target key start
LH: loop header
LB: loop body
LE: loop exit
PB: predicated region body
PF: predicated region fallthrough
CT: control target
= control target key end

     0   :  { %s4360_s0 = inlined_call_operand.vmem [shape: f32[4,16,128], index: 0, kind: input, shape index: {}]   ;;  %s4361_s1 = inlined_call_operand.hbm [shape: bf16[2,128,384], index: 1, kind: input, shape index: {}]   ;;  %s4362_s2 = inlined_call_operand.hbm [shape: bf16[2,128,128], index: 2, kind: input, shape index: {}]   ;;  %s4363_s3 = inlined_call_operand.hbm [shape: bf16[2,128,256], index: 3, kind: input, shape index: {}]   ;;  %s4364_s4 = inlined_call_operand.hbm [shape: bf16[2,256,128], index: 4, kind: input, shape index: {}]   ;;  %s4365_s5 = inlined_call_operand.vmem [shape: f32[2,10,256], index: 5, kind: input, shape index: {}]   ;;  %s4366_s6 = inlined_call_operand.hbm [shape: f32[4,16,128], index: 6, kind: output, shape index: {}]  }
   0x1   :  { %4380 = sst [smem:[#allocation25_spill]] %s4361_s1 }
   0x2   :  { %4381 = sst [smem:[#allocation26_spill]] %s4362_s2 }
   0x3   :  { %11 = vsyncpa [#allocation3], 0 }
   0x4   :  { %13 = vsyncpa [#allocation3 + $0x1], 0 }
   0x5   :  { %14 = vsyncpa [#allocation6], 0 }
   0x6   :  { %16 = vsyncpa [#allocation6 + $0x1], 0 }
   0x7   :  { %17 = vsyncpa [#allocation9], 0 }
   0x8   :  { %19 = vsyncpa [#allocation9 + $0x1], 0 }
   0x9   :  { %20 = vsyncpa [#allocation4], 0 }
   0xa   :  { %22 = vsyncpa [#allocation4 + $0x1], 0  ;;  %s3655_s21 = smov 0   ;;  %s3657_s22 = smov 0  }
   0xb   :  { %s3659_s23 = smov 0   ;;  %s3661_s24 = smov 0  }
   0xc   :  { %s3663_s25 = smov 0   ;;  %s3665_s26 = smov 0  }
   0xd   :  { %s3667_s27 = smov 0   ;;  %s3669_s28 = smov 0  }
   0xe   :  { %s3671_s29 = smov 0   ;;  %s3673_s30 = smov 0  }
   0xf   :  { %s3675_s7 = smov 0  }
  0x10 LB: > { %4382 = sst [smem:[#allocation15_spill]] %s3559_s21  ;;  %s3709_s8 = sadd.s32 4294967295, %s3599_s7   ;;  %s3599_s7 = sphi %s3675_s7, %s28_s7   ;;  %s3595_s30 = sphi %s3673_s30, %s4417_s30   ;;  %s3591_s29 = sphi %s3671_s29, %s4423_s29   ;;  %s3587_s28 = sphi %s3669_s28, %s4415_s28   ;;  %s3583_s27 = sphi %s3667_s27, %s4422_s27   ;;  %s3579_s26 = sphi %s3665_s26, %s4414_s26   ;;  %s3575_s25 = sphi %s3663_s25, %s4421_s25   ;;  %s3571_s24 = sphi %s3661_s24, %s4420_s24   ;;  %s3567_s23 = sphi %s3659_s23, %s4412_s23   ;;  %s3563_s22 = sphi %s3657_s22, %s4419_s22   ;;  %s3559_s21 = sphi %s3655_s21, %s4418_s21  }
  0x11   : > { %4383 = sst [smem:[#allocation16_spill]] %s3567_s23  ;;  %s2679_s9 = sadd.s32 4294967294, %s3599_s7  }
  0x12   : > { %4384 = sst [smem:[#allocation17_spill]] %s3579_s26  ;;  %s37_s10 = sadd.s32 1, %s3591_s29 }
  0x13   : > { %4385 = sst [smem:[#allocation18_spill]] %s3595_s30  ;;  %s40_s11 = sadd.s32 1, %s3595_s30 }
  0x14   : > { %4386 = sst [smem:[#allocation19_spill]] %s3599_s7  ;;  %p38_p0 = scmp.ge.s32.totalorder %s37_s10, 2 }
  0x15   : > { %s73_s12 = sadd.s32 1, %s3579_s26  ;;  %p80_p1 = scmp.ne.s32.totalorder %s3579_s26, %s3575_s25 }
  0x16   : > { %p81_p2 = scmp.eq.s32.totalorder %s3599_s7, 0  ;;  %s4425_s10 = smov (%p38_p0, %s37_s10), 0 }
  0x17   : > { %4387 = sst [smem:[#allocation20_spill]] %s4425_s10  ;;  %s4427_s11 = smov (!%p38_p0, %s40_s11), %s3595_s30 }
  0x18   : > { %s70_s13 = ssub.s32 %s3591_s29, %s4425_s10  ;;  %p3723_p3 = por %p81_p2, %p80_p1 }
  0x19   : > { %p42_p4 = scmp.ge.s32.totalorder %s4427_s11, 2  ;;  %p71_p5 = scmp.eq.s32.totalorder %s70_s13, 0 }
  0x1a   : > { %p86_p6 = scmp.ne.s32.totalorder %s3575_s25, %s3571_s24  ;;  %p87_p7 = scmp.eq.s32.totalorder %s3709_s8, 0 }
  0x1b   : > { %s4429_s11 = smov (%p42_p4, %s4427_s11), 0  ;;  %s203_s18 = sadd.s32 1, %s3567_s23 }
  0x1c   : > { %4389 = sst [smem:[#allocation21_spill]] %s4429_s11  ;;  %p3734_p8 = por %p87_p7, %p86_p6 }
  0x1d   : > { %s3732_s15 = scalar_select %p71_p5, %s3579_s26, %s73_s12  }
  0x1e   : > { %s4391_s16 = scalar_select %p3734_p8, 1, 0 }
  0x1f   : > { %4390 = sst [smem:[#allocation22_spill]] %s3732_s15  ;;  %s200_s17 = ssub.s32 %s3595_s30, %s4429_s11 }
  0x20   : > { %p201_p9 = scmp.eq.s32.totalorder %s200_s17, 0  ;;  %p213_p10 = scmp.ne.s32.totalorder %s3567_s23, %s3563_s22 }
  0x21   : > { %p214_p11 = scmp.eq.s32.totalorder %s3709_s8, 3  ;;  %p219_p13 = scmp.ne.s32.totalorder %s3563_s22, %s3559_s21 }
  0x22   : > { %s3745_s19 = scalar_select %p201_p9, %s3567_s23, %s203_s18  }
  0x23   : > { %p3747_p12 = por %p214_p11, %p213_p10  ;;  %p220_p0 = scmp.eq.s32.totalorder %s2679_s9, 3 }
  0x24   : > { %4392 = sst [smem:[#allocation23_spill]] %s3745_s19  ;;  %p3081_p1 = scmp.lt.s32.totalorder %s3599_s7, 4 }
  0x25   : > { %s4393_s20 = scalar_select %p3747_p12, 1, 0 }
  0x26   : > { %s3755_s24 = sand.u32 1, %s3579_s26   ;;  %p3757_p2 = por %p220_p0, %p219_p13 }
  0x27   : > { %s271_s13 = sand.u32 1, %s3599_s7   ;;  %p3764_p4 = pnand %p3081_p1, %p3723_p3 }
  0x28   : > { %s4394_s12 = scalar_select %p3757_p2, 1, 0 }
  0x29   : > { %s2683_s18 = sshll.u32 %s3755_s24, 6  ;;  %s2798_s11 = sshll.u32 %s3591_s29, 10 }
  0x2a   : > { %4395 = sst [smem:[#allocation24_spill]] %s4394_s12  ;;  %s4397_s2 = sld [smem:[#allocation26_spill]] }
  0x2b   : > { %s275_s15 = scalar_lea.vmem [#allocation5], %s2683_s18  ;;  %s3778_s14 = scalar_lea.sflag [#allocation6], %s271_s13 }
  0x2c   : > { %s282_s26 = sshll.u32 %s275_s15, 4  ;;  %p3784_p6 = pneg %p3764_p4  ;;  %s3775_s26 = int_to_ptr.vmem [resolvable:$true] %s282_s26 }
  0x30   : > { %s3773_s9 = scalar_lea.hbm %s4397_s2, %s2798_s11  ;;  %s3354_s11 = scalar_lea.hbm %s4397_s2, 2048 }
  0x31   : > { %s3349_s19 = scalar_lea.hbm %s3773_s9, 1024  ;;  %p3355_p10 = scmp.lt.u32.totalorder %s3773_s9, %s4397_s2 }
  0x32   : > { %p3350_p5 = scmp.ne.s32.totalorder %s3773_s9, %s3349_s19  ;;  %p3356_p11 = scmp.lt.u32.totalorder %s3354_s11, %s3349_s19 }
  0x33   : > { %p3358_p0 = scmp.lt.u32.totalorder %s3349_s19, %s3773_s9 }
  0x34   : > { %p3352_p7 = pnand %p3784_p6, %p3350_p5  ;;  %p3357_p13 = por %p3356_p11, %p3355_p10 }
  0x36   : > { %p3353_p9 = pneg %p3352_p7  ;;  %p3359_p1 = por %p3358_p0, %p3357_p13 }
  0x38   : > { %p3360_p3 = pnand %p3359_p1, %p3353_p9 }
  0x3a   : > { %3363 = shalt.err (!%p3360_p3)
}
  0x3b   : > { %s3364_s13 = scalar_lea.vmem %s3775_s26, 1024  ;;  %s3601_s30 = smov [#allocation5]  }
  0x3c   : > { %p3365_p5 = scmp.ne.s32.totalorder %s3775_s26, %s3364_s13  ;;  %s3369_s10 = sshll.u32 %s3601_s30, 4  ;;  %s3370_s10 = int_to_ptr.vmem [resolvable:$false] %s3369_s10 }
  0x3d   : > { %s3371_s15 = scalar_lea.vmem %s3370_s10, 2048  ;;  %p3372_p12 = scmp.lt.s32.totalorder %s3775_s26, %s3370_s10 }
  0x3e   : > { %p3367_p7 = pnand %p3365_p5, %p3784_p6  ;;  %p3373_p8 = scmp.lt.s32.totalorder %s3371_s15, %s3364_s13 }
  0x40   : > { %p3368_p2 = pneg %p3367_p7  ;;  %p3374_p10 = por %p3373_p8, %p3372_p12 }
  0x42   : > { %p3375_p11 = pnand %p3374_p10, %p3368_p2 }
  0x44   : > { %3378 = shalt.err (!%p3375_p11)
}
  0x45   : > { %s4376_s19 = smov 64   ;;  %s4377_s11 = smov 4  }
  0x46   : > { %3070 = dma.hbm_to_vmem [thread:$0]  (!%p3764_p4), %s3773_s9, 1024, %s3775_s26, %s3778_s14, %s4376_s19, %s4376_s19, %s4377_s11  }
  0x47   : > { %p340_p8 = scmp.lt.s32.totalorder %s3599_s7, 5  ;;  %p4399_p12 = scmp.ge.s32.totalorder %s3599_s7, 1 }
  0x48   : > { %s3051_s13 = smul.u32 192, %s3755_s24  ;;  %s4401_s1 = sld [smem:[#allocation25_spill]] }
  0x49   : > { %p3814_p2 = pnand %p4399_p12, %p340_p8  ;;  %s3052_s30 = smul.u32 3072, %s3591_s29 }
  0x4a   : > { %s254_s12 = scalar_lea.vmem [#allocation2], %s3051_s13  ;;  %s2686_s26 = sshll.u32 %s3755_s24, 7 }
  0x4b   : > { %s4400_s18 = scalar_select %p3814_p2, 1, 0 }
  0x4c   : > { %s261_s21 = sshll.u32 %s254_s12, 4  ;;  %s251_s9 = scalar_lea.sflag [#allocation3], %s3755_s24  ;;  %s3825_s21 = int_to_ptr.vmem [resolvable:$true] %s261_s21 }
  0x4e   : > { %s3823_s2 = scalar_lea.hbm %s4401_s1, %s3052_s30  ;;  %s3384_s30 = scalar_lea.hbm %s4401_s1, 6144 }
  0x4f   : > { %s3379_s19 = scalar_lea.hbm %s3823_s2, 3072  ;;  %p3385_p0 = scmp.lt.u32.totalorder %s3823_s2, %s4401_s1 }
  0x50   : > { %p3380_p3 = scmp.ne.s32.totalorder %s3823_s2, %s3379_s19  ;;  %p3386_p1 = scmp.lt.u32.totalorder %s3384_s30, %s3379_s19 }
  0x51   : > { %p3388_p7 = scmp.lt.u32.totalorder %s3379_s19, %s3823_s2 }
  0x52   : > { %p3382_p9 = pnand %p3380_p3, %p3784_p6  ;;  %p3387_p5 = por %p3386_p1, %p3385_p0 }
  0x54   : > { %p3383_p13 = pneg %p3382_p9  ;;  %p3389_p10 = por %p3388_p7, %p3387_p5 }
  0x56   : > { %p3390_p11 = pnand %p3389_p10, %p3383_p13 }
  0x58   : > { %3393 = shalt.err (!%p3390_p11)
}
  0x59   : > { %s3394_s12 = scalar_lea.vmem %s3825_s21, 3072  ;;  %s3604_s7 = smov [#allocation2]  }
  0x5a   : > { %p3395_p8 = scmp.ne.s32.totalorder %s3825_s21, %s3394_s12  ;;  %s3399_s11 = sshll.u32 %s3604_s7, 4  ;;  %s3400_s11 = int_to_ptr.vmem [resolvable:$false] %s3399_s11 }
  0x5b   : > { %s3401_s13 = scalar_lea.vmem %s3400_s11, 6144  ;;  %p3402_p9 = scmp.lt.s32.totalorder %s3825_s21, %s3400_s11 }
  0x5c   : > { %p3397_p12 = pnand %p3395_p8, %p3784_p6  ;;  %p3403_p2 = scmp.lt.s32.totalorder %s3401_s13, %s3394_s12 }
  0x5e   : > { %p3398_p3 = pneg %p3397_p12  ;;  %p3404_p0 = por %p3403_p2, %p3402_p9 }
  0x60   : > { %p3405_p1 = pnand %p3404_p0, %p3398_p3 }
  0x62   : > { %3408 = shalt.err (!%p3405_p1)
}
  0x63   : > { %s3605_s19 = smov 192   ;;  %s3606_s30 = smov 12  }
  0x64   : > { %3067 = dma.hbm_to_vmem [thread:$0]  (!%p3764_p4), %s3823_s2, 3072, %s3825_s21, %s251_s9, %s3605_s19, %s3605_s19, %s3606_s30  }
  0x65   : > { %s2799_s10 = sshll.u32 %s3591_s29, 11  ;;  %s296_s11 = scalar_lea.vmem [#allocation7], %s2686_s26 }
  0x66   : > { %s3858_s7 = scalar_lea.hbm %s4363_s3, %s2799_s10  ;;  %s303_s13 = sshll.u32 %s296_s11, 4  ;;  %s3862_s13 = int_to_ptr.vmem [resolvable:$true] %s303_s13 }
  0x67   : > { %s3409_s1 = scalar_lea.hbm %s3858_s7, 2048  ;;  %s3414_s9 = scalar_lea.hbm %s4363_s3, 4096 }
  0x68   : > { %p3410_p2 = scmp.ne.s32.totalorder %s3858_s7, %s3409_s1  ;;  %p3415_p7 = scmp.lt.u32.totalorder %s3858_s7, %s4363_s3 }
  0x69   : > { %p3416_p10 = scmp.lt.u32.totalorder %s3414_s9, %s3409_s1  ;;  %p3418_p8 = scmp.lt.u32.totalorder %s3409_s1, %s3858_s7 }
  0x6a   : > { %p3412_p13 = pnand %p3410_p2, %p3784_p6 }
  0x6b   : > { %p3417_p11 = por %p3416_p10, %p3415_p7 }
  0x6c   : > { %p3413_p5 = pneg %p3412_p13 }
  0x6d   : > { %p3419_p12 = por %p3418_p8, %p3417_p11 }
  0x6f   : > { %p3420_p3 = pnand %p3419_p12, %p3413_p5 }
  0x71   : > { %3423 = shalt.err (!%p3420_p3)
}
  0x72   : > { %s3424_s15 = scalar_lea.vmem %s3862_s13, 2048  ;;  %s3607_s12 = smov [#allocation7]  }
  0x73   : > { %p3425_p9 = scmp.ne.s32.totalorder %s3862_s13, %s3424_s15  ;;  %s3429_s11 = sshll.u32 %s3607_s12, 4  ;;  %s3430_s11 = int_to_ptr.vmem [resolvable:$false] %s3429_s11 }
  0x74   : > { %s3431_s2 = scalar_lea.vmem %s3430_s11, 4096  ;;  %p3432_p2 = scmp.lt.s32.totalorder %s3862_s13, %s3430_s11 }
  0x75   : > { %p3427_p0 = pnand %p3425_p9, %p3784_p6  ;;  %p3433_p13 = scmp.lt.s32.totalorder %s3431_s2, %s3424_s15 }
  0x77   : > { %p3428_p1 = pneg %p3427_p0  ;;  %p3434_p7 = por %p3433_p13, %p3432_p2 }
  0x79   : > { %p3435_p10 = pnand %p3434_p7, %p3428_p1 }
  0x7b   : > { %3438 = shalt.err (!%p3435_p10)
}
  0x7c   : > { %s3608_s1 = smov 128   ;;  %s3609_s21 = smov 8  }
  0x7d   : > { %3073 = dma.hbm_to_vmem [thread:$0]  (!%p3764_p4), %s3858_s7, 2048, %s3862_s13, %s3778_s14, %s3608_s1, %s3608_s1, %s3609_s21  }
  0x7e   : > { %s3891_s30 = scalar_lea.hbm %s4364_s4, %s2799_s10  ;;  %s317_s15 = scalar_lea.vmem [#allocation8], %s2686_s26 }
  0x7f   : > { %s324_s12 = sshll.u32 %s317_s15, 4  ;;  %s314_s11 = scalar_lea.sflag [#allocation9], %s3755_s24  ;;  %s3895_s12 = int_to_ptr.vmem [resolvable:$true] %s324_s12 }
  0x80   : > { %s3439_s2 = scalar_lea.hbm %s3891_s30, 2048  ;;  %s3444_s10 = scalar_lea.hbm %s4364_s4, 4096 }
  0x81   : > { %p3440_p5 = scmp.ne.s32.totalorder %s3891_s30, %s3439_s2  ;;  %p3445_p12 = scmp.lt.u32.totalorder %s3891_s30, %s4364_s4 }
  0x82   : > { %p3446_p3 = scmp.lt.u32.totalorder %s3444_s10, %s3439_s2  ;;  %p3448_p0 = scmp.lt.u32.totalorder %s3439_s2, %s3891_s30 }
  0x83   : > { %p3442_p11 = pnand %p3440_p5, %p3784_p6 }
  0x84   : > { %p3447_p9 = por %p3446_p3, %p3445_p12 }
  0x85   : > { %p3443_p8 = pneg %p3442_p11 }
  0x86   : > { %p3449_p1 = por %p3448_p0, %p3447_p9 }
  0x88   : > { %p3450_p2 = pnand %p3449_p1, %p3443_p8 }
  0x8a   : > { %3453 = shalt.err (!%p3450_p2)
}
  0x8b   : > { %s3454_s26 = scalar_lea.vmem %s3895_s12, 2048  ;;  %s3610_s21 = smov [#allocation8]  }
  0x8c   : > { %p3455_p13 = scmp.ne.s32.totalorder %s3895_s12, %s3454_s26  ;;  %s3459_s9 = sshll.u32 %s3610_s21, 4  ;;  %s3460_s9 = int_to_ptr.vmem [resolvable:$false] %s3459_s9 }
  0x8d   : > { %s3461_s19 = scalar_lea.vmem %s3460_s9, 4096  ;;  %p3462_p5 = scmp.lt.s32.totalorder %s3895_s12, %s3460_s9 }
  0x8e   : > { %p3457_p7 = pnand %p3455_p13, %p3784_p6  ;;  %p3463_p11 = scmp.lt.s32.totalorder %s3461_s19, %s3454_s26 }
  0x90   : > { %p3458_p10 = pneg %p3457_p7  ;;  %p3464_p12 = por %p3463_p11, %p3462_p5 }
  0x92   : > { %p3465_p3 = pnand %p3464_p12, %p3458_p10 }
  0x94   : > { %3468 = shalt.err (!%p3465_p3)
}
  0x95   : > { %s4402_s15 = smov 4   ;;  %s4403_s2 = smov 64  }
  0x96   : > { %3076 = dma.hbm_to_vmem [thread:$0]  (!%p3764_p4), %s3891_s30, 2048, %s3895_s12, %s314_s11, %s4403_s2, %s4403_s2, %s4402_s15  }
  0x97   : > { %p4404_p6 = scmp.ne.s32.totalorder %s4400_s18, 0 }
  0x98   : > { %s346_s23 = sand.u32 (!%p4404_p6), 1, %s3575_s25   ;;  %p4405_p8 = scmp.ne.s32.totalorder (!%p4404_p6), %s4391_s16, 0 }
  0x99   : > { %344 = sbr.rel (%p4404_p6) target bundleno = 4346 (0x10fa), region = 44  ;;  %s347_s7 = scalar_lea.sflag (!%p4404_p6), [#allocation3], %s346_s23 }
  0x9a   : > { %s3053_s14 = smul.u32 (!%p4404_p6), 192, %s346_s23 }
  0x9c   : > { %s3927_s10 = scalar_lea.vmem (!%p4404_p6), [#allocation2], %s3053_s14 }
  0xa0   : > { %3542 = dma.done.wait (%p4405_p8), %s347_s7, 3072  }
  0xa1   : > { %3544 = vsyncadd (%p4405_p8), %s347_s7, 4294964224  ;;  %s355_s24 = sand.u32 1, %s3709_s8   ;;  %s2693_s17 = sshll.u32 %s346_s23, 6 }
  0xa2   : > { %s356_s30 = scalar_lea.sflag [#allocation6], %s355_s24  ;;  %s3934_s12 = scalar_lea.vmem [#allocation5], %s2693_s17 }
  0xa3   : > { %3546 = dma.done.wait (%p4405_p8), %s356_s30, 3072  }
  0xa4   : > { %3548 = vsyncadd (%p4405_p8), %s356_s30, 4294964224  ;;  %s2694_s18 = sshll.u32 %s346_s23, 7  ;;  %s374_s13 = scalar_lea.sflag [#allocation9], %s346_s23 }
  0xa5   : > { %s3940_s11 = scalar_lea.vmem [#allocation7], %s2694_s18  ;;  %s3942_s1 = scalar_lea.vmem [#allocation8], %s2694_s18 }
  0xa6   : > { %3550 = dma.done.wait (%p4405_p8), %s374_s13, 2048  }
  0xa7   : > { %3552 = vsyncadd (%p4405_p8), %s374_s13, 4294965248  ;;  %s429_s8 = sand.u32 1, %s3563_s22   ;;  %s2697_s26 = sshll.u32 %s3587_s28, 1 }
  0xa8   : > { %s2696_s21 = sshll.u32 %s429_s8, 5  ;;  %p433_p4 = scmp.lt.s32.totalorder %s2697_s26, 3 }
  0xa9   : > { %p439_p9 = scmp.lt.s32.totalorder %s3583_s27, 1  ;;  %s3962_s17 = scalar_lea.vmem [#allocation10], %s2696_s21 }
  0xaa   : > { %s4431_s26 = smov (!%p433_p4, %s2697_s26), 3  ;;  %p2702_p0 = scmp.ne.s32.totalorder %s3583_s27, 0 }
  0xab   : > { %s440_s9 = scalar_select %p439_p9, %s3583_s27, 1 }
  0xac   : > { %s2801_s19 = sshll.u32 %s4431_s26, 4  ;;  %449 = sbr.rel (%p2702_p0) target bundleno = 179 (0xb3), region = 64 }
  0xad   : > { %s437_s23 = scalar_lea.vmem %s4360_s0, %s2801_s19  ;;  %s2802_s16 = sshll.u32 %s440_s9, 5 }
  0xae   : > { %s3960_s24 = scalar_lea.vmem %s4365_s5, %s2802_s16  ;;  %v450_v0 = vld [vmem:[%s437_s23] sm:$0xff] (!%p2702_p0)  ;;  %v451_v1 = vld [vmem:[%s437_s23 + $0x8] sm:$0xff] (!%p2702_p0)  ;;  %v452_v2 = vld [vmem:[%s437_s23 + $0x10] sm:$0xff] (!%p2702_p0) }
  0xaf   : > { %454 = vst [vmem:[%s3962_s17] sm:$0xff] (!%p2702_p0), %v450_v0  ;;  %455 = vst [vmem:[%s3962_s17 + $0x8] sm:$0xff] (!%p2702_p0), %v451_v1  ;;  %v453_v3 = vld [vmem:[%s437_s23 + $0x18] sm:$0xff] (!%p2702_p0) }
  0xb0   : > { %456 = vst [vmem:[%s3962_s17 + $0x10] sm:$0xff] (!%p2702_p0), %v452_v2  ;;  %457 = vst [vmem:[%s3962_s17 + $0x18] sm:$0xff] (!%p2702_p0), %v453_v3 }
  0xb3 PF: > { %v3185_v4 = vld [vmem:[%s3927_s10 + $0x4] ss:$12 sps:$4 sm:$0xff]   ;;  %v3187_v5 = vld [vmem:[%s3927_s10] ss:$12 sps:$4 sm:$0xff]   ;;  %v3611_v6 = vmov 0   ;;  %v3612_v35 = vmov 0.0  }
  0xb4   : > { %656 = vmatprep.mubr.bf16.mxu0 %v3611_v6  ;;  %624 = vmatprep.subr.bf16.mxu0 %v3185_v4  ;;  %v3188_v7 = vld [vmem:[%s3927_s10 + $0x1c] ss:$12 sps:$4 sm:$0xff]   ;;  %v3190_v8 = vld [vmem:[%s3927_s10 + $0x18] ss:$12 sps:$4 sm:$0xff]   ;;  %v3191_v9 = vld [vmem:[%s3927_s10 + $0x34] ss:$12 sps:$4 sm:$0xff]  }
  0xb5   : > { %625 = vmatpush1.bf16.msra.mxu0 %v3187_v5  ;;  %v3193_v10 = vld [vmem:[%s3927_s10 + $0x30] ss:$12 sps:$4 sm:$0xff]   ;;  %v3194_v11 = vld [vmem:[%s3927_s10 + $0x4c] ss:$12 sps:$4 sm:$0xff]   ;;  %v3196_v13 = vld [vmem:[%s3927_s10 + $0x48] ss:$12 sps:$4 sm:$0xff]  }
  0xb6   : > { %626 = vmatprep.subr.bf16.mxu0 %v3188_v7  ;;  %v458_v12 = vld [vmem:[%s3962_s17] sm:$0xff]  ;;  %v459_v15 = vld [vmem:[%s3962_s17 + $0x8] sm:$0xff]  ;;  %v3212_v24 = vld [vmem:[%s3927_s10 + $0x50] ss:$12 sps:$4 sm:$0xff]   ;;  %vm3613_vm0 = vmmov 0   ;;  %vm747_vm1 = vcmask 261120  }
  0xb7   : > { %v3197_v14 = vld [vmem:[%s3927_s10 + $0x64] ss:$12 sps:$4 sm:$0xff]   ;;  %v462_v16 = vpack.c.bf16 %v459_v15, %v458_v12  ;;  %v3209_v17 = vld [vmem:[%s3927_s10 + $0x8] ss:$12 sps:$4 sm:$0xff]   ;;  %v3210_v18 = vld [vmem:[%s3927_s10 + $0x20] ss:$12 sps:$4 sm:$0xff]  }
  0xb8   : > { %v3199_v19 = vld [vmem:[%s3927_s10 + $0x60] ss:$12 sps:$4 sm:$0xff]   ;;  %2891 = vmatprep.subr.bf16.mxu1 %v3209_v17  ;;  %v3200_v20 = vld [vmem:[%s3927_s10 + $0x7c] ss:$12 sps:$4 sm:$0xff]   ;;  %v3211_v21 = vld [vmem:[%s3927_s10 + $0x38] ss:$12 sps:$4 sm:$0xff]  }
  0xb9   : > { %627 = vmatpush1.bf16.msra.mxu0 %v3190_v8  ;;  %2907 = vmatprep.mubr.bf16.mxu1 %v462_v16  ;;  %v3202_v22 = vld [vmem:[%s3927_s10 + $0x78] ss:$12 sps:$4 sm:$0xff]   ;;  %v3203_v23 = vld [vmem:[%s3927_s10 + $0x94] ss:$12 sps:$4 sm:$0xff]   ;;  %v3205_v25 = vld [vmem:[%s3927_s10 + $0x90] ss:$12 sps:$4 sm:$0xff]  }
  0xba   : > { %628 = vmatprep.subr.bf16.mxu0 %v3191_v9  ;;  %2892 = vmatpush3.bf16.msra.mxu1 %v3209_v17  ;;  %v3206_v26 = vld [vmem:[%s3927_s10 + $0xac] ss:$12 sps:$4 sm:$0xff]   ;;  %v3213_v27 = vld [vmem:[%s3927_s10 + $0x68] ss:$12 sps:$4 sm:$0xff]   ;;  %v3216_v33 = vld [vmem:[%s3927_s10 + $0xb0] ss:$12 sps:$4 sm:$0xff]  }
  0xbb   : > { %2893 = vmatprep.subr.bf16.mxu1 %v3210_v18  ;;  %v3208_v28 = vld [vmem:[%s3927_s10 + $0xa8] ss:$12 sps:$4 sm:$0xff]   ;;  %v3214_v29 = vld [vmem:[%s3927_s10 + $0x80] ss:$12 sps:$4 sm:$0xff]   ;;  %v3215_v30 = vld [vmem:[%s3927_s10 + $0x98] ss:$12 sps:$4 sm:$0xff]  }
  0xbc   : > { %v460_v31 = vld [vmem:[%s3962_s17 + $0x10] sm:$0xff]  ;;  %v461_v32 = vld [vmem:[%s3962_s17 + $0x18] sm:$0xff]  ;;  %v726_v37 = vld [vmem:[%s3960_s24] ss:$0 sm:$0xff]  ;;  %vm842_vm2 = vcmask 130048   ;;  %s3614_s27 = smov 96  }
  0xbd   : > { %629 = vmatpush1.bf16.msra.mxu0 %v3193_v10  ;;  %v463_v34 = vpack.c.bf16 %v461_v32, %v460_v31  ;;  %v731_v39 = vld [vmem:[%s3960_s24 + $0x1] ss:$0 sm:$0xff]  ;;  %v736_v52 = vld [vmem:[%s3960_s24 + $0x2] ss:$0 sm:$0xff]  ;;  %s3615_s10 = smov 64   ;;  %s3616_s30 = smov 32  }
  0xbe   : > { %630 = vmatprep.subr.bf16.mxu0 %v3194_v11  ;;  %2894 = vmatpush3.bf16.msra.mxu1 %v3210_v18  ;;  %s2504_s18 = sshll.u32 %s3962_s17, 4  ;;  %s4299_s26 = scalar_lea.sflag [#allocation4], %s429_s8  ;;  %s4293_s18 = int_to_ptr.vmem [resolvable:$true] %s2504_s18 }
  0xbf   : > { %2895 = vmatprep.subr.bf16.mxu1 %v3211_v21  ;;  %p4406_p2 = scmp.ne.s32.totalorder %s4393_s20, 0  ;;  %s3617_s21 = smov [#allocation10]  }
  0xc0   : > { %s3473_s9 = sshll.u32 %s3617_s21, 4  ;;  %s3474_s9 = int_to_ptr.vmem [resolvable:$false] %s3473_s9 }
  0xc1   : > { %631 = vmatpush1.bf16.msra.mxu0 %v3196_v13  ;;  %s3475_s19 = scalar_lea.vmem %s3474_s9, 1024  ;;  %p3476_p10 = scmp.lt.s32.totalorder %s4293_s18, %s3474_s9 }
  0xc2   : > { %632 = vmatprep.subr.bf16.mxu0 %v3197_v14  ;;  %2896 = vmatpush3.bf16.msra.mxu1 %v3211_v21 }
  0xc3   : > { %2897 = vmatprep.subr.bf16.mxu1 %v3212_v24 }
  0xc5   : > { %633 = vmatpush1.bf16.msra.mxu0 %v3199_v19 }
  0xc6   : > { %634 = vmatprep.subr.bf16.mxu0 %v3200_v20  ;;  %2898 = vmatpush3.bf16.msra.mxu1 %v3212_v24 }
  0xc7   : > { %2899 = vmatprep.subr.bf16.mxu1 %v3213_v27 }
  0xc9   : > { %635 = vmatpush1.bf16.msra.mxu0 %v3202_v22 }
  0xca   : > { %636 = vmatprep.subr.bf16.mxu0 %v3203_v23  ;;  %2900 = vmatpush3.bf16.msra.mxu1 %v3213_v27 }
  0xcb   : > { %2901 = vmatprep.subr.bf16.mxu1 %v3214_v29 }
  0xcd   : > { %637 = vmatpush1.bf16.msra.mxu0 %v3205_v25 }
  0xce   : > { %638 = vmatprep.subr.bf16.mxu0 %v3206_v26  ;;  %2902 = vmatpush3.bf16.msra.mxu1 %v3214_v29 }
  0xcf   : > { %2903 = vmatprep.subr.bf16.mxu1 %v3215_v30 }
  0xd1   : > { %639 = vmatpush1.bf16.msra.mxu0 %v3208_v28 }
  0xd2   : > { %2904 = vmatpush3.bf16.msra.mxu1 %v3215_v30  ;;  %2917 = vmatprep.subr.bf16.mxu0 %v3612_v35 }
  0xd3   : > { %2905 = vmatprep.subr.bf16.mxu1 %v3216_v33 }
  0xd4   : > { %657 = vmatmul.mubr.bf16.vlgmr.msra.gmra.mrb[0].mxu0 %v462_v16 }
  0xd5   : > { %666 = vmatprep.mubr.bf16.mxu0 %v3611_v6 }
  0xd6   : > { %2906 = vmatpush3.bf16.msra.mxu1 %v3216_v33 }
  0xd7   : > { %2911 = vmatprep.subr.bf16.mxu1 %v3612_v35 }
  0xd9   : > { %2908 = vmatmul.mubr.bf16.vlgmr.msra.gmra.mrb[0].mxu1 %v463_v34 }
  0xda   : > { %2913 = vmatprep.mubr.msk.bf16.mxu1 %vm3613_vm0, %v3612_v35 }
  0xdc   : > { %667 = vmatmul.mubr.bf16.gmra.mrb[4].mxu0 %v463_v34 }
  0xdd   : > { %2919 = vmatprep.mubr.msk.bf16.mxu0 %vm3613_vm0, %v3612_v35 }
 0x1a7   : > { %v658_v36 = vpop.f32.mrb[0].mxu0 }
 0x1a8   : > { %v660_v38 = vpop.f32.mrb[1].mxu0  ;;  %v727_v41 = vadd.f32 %v726_v37, %v658_v36 }
 0x1a9   : > { %v662_v40 = vpop.f32.mrb[2].mxu0  ;;  %v732_v44 = vadd.f32 %v731_v39, %v660_v38 }
 0x1aa   : > { %v728_v42 = vadd.f32 %v726_v37, %v662_v40  ;;  %v664_v43 = vpop.f32.mrb[3].mxu0 }
 0x1ab   : > { %v733_v45 = vadd.f32 %v731_v39, %v664_v43 }
 0x1ac   : > { %v4007_v46 = vpack.c.bf16 %v728_v42, %v727_v41  ;;  %v2909_v58 = vpop.f32.mrb[0].mxu1 }
 0x1ad   : > { %v4009_v47 = vpack.c.bf16 %v733_v45, %v732_v44  ;;  %v739_v60 = vadd.f32 %v2909_v58, %v736_v52  ;;  %v711_v61 = vpop.f32.mrb[1].mxu1 }
 0x1ae   : > { %v737_v63 = vadd.f32 %v736_v52, %v711_v61  ;;  %v2910_v0 = vpop.f32.mrb[2].mxu1 }
 0x1af   : > { %v668_v48 = vpop.f32.mrb[4].mxu0  ;;  %v752_v49 = vsel %vm747_vm1, %v4009_v47, 0  ;;  %v740_v1 = vadd.f32 %v2910_v0, %v736_v52  ;;  %v714_v2 = vpop.f32.mrb[3].mxu1 }
 0x1b0   : > { %v670_v50 = vpop.f32.mrb[5].mxu0  ;;  %2912 = vmatpush3.bf16.xpose.msra.mxu1 %v752_v49  ;;  %v729_v53 = vadd.f32 %v726_v37, %v668_v48  ;;  %v738_v4 = vadd.f32 %v736_v52, %v714_v2 }
 0x1b1   : > { %v672_v51 = vpop.f32.mrb[6].mxu0  ;;  %2923 = vmatprep.subr.bf16.mxu1 %v3612_v35  ;;  %v734_v56 = vadd.f32 %v731_v39, %v670_v50  ;;  %v4023_v5 = vpack.c.bf16 %v740_v1, %v739_v60 }
 0x1b2   : > { %v730_v54 = vadd.f32 %v726_v37, %v672_v51  ;;  %v674_v55 = vpop.f32.mrb[7].mxu0  ;;  %v4027_v7 = vpack.c.bf16 %v738_v4, %v737_v63 }
 0x1b3   : > { %v735_v57 = vadd.f32 %v731_v39, %v674_v55 }
 0x1b4   : > { %v4015_v59 = vpack.c.bf16 %v730_v54, %v729_v53 }
 0x1b5   : > { %v4017_v62 = vpack.c.bf16 %v735_v57, %v734_v56 }
 0x1b7   : > { %2914 = vmatmul.mubr.msk.bf16.vlgmr.msra.gmra.mrb[4].mxu1 %vm747_vm1, %v4007_v46  ;;  %v799_v3 = vsel %vm747_vm1, %v4017_v62, 0 }
 0x1b8   : > { %2918 = vmatpush3.bf16.xpose.msra.mxu0 %v799_v3  ;;  %2925 = vmatprep.mubr.msk.bf16.mxu1 %vm3613_vm0, %v3612_v35 }
 0x1b9   : > { %2929 = vmatprep.subr.bf16.mxu0 %v3612_v35  ;;  %2924 = vmatpush3.bf16.msra.mxu1 %v4027_v7 }
 0x1ba   : > { %2935 = vmatprep.subr.bf16.mxu1 %v3612_v35 }
 0x1bf   : > { %2920 = vmatmul.mubr.msk.bf16.vlgmr.msra.gmra.mrb[8].mxu0 %vm747_vm1, %v4015_v59 }
 0x1c0   : > { %2930 = vmatpush3.bf16.msra.mxu0 %v4023_v5  ;;  %2931 = vmatprep.mubr.msk.bf16.mxu0 %vm3613_vm0, %v3612_v35 }
 0x1c1   : > { %2941 = vmatprep.subr.bf16.mxu0 %v3612_v35 }
 0x28a   : > { %v788_v8 = vpop.f32.mrb[4].mxu1 }
 0x28b   : > { %v2915_v9 = vpop.f32.mrb[5].mxu1  ;;  %v843_v33 = vsel %vm842_vm2, %v788_v8, -inf }
 0x28c   : > { %v791_v10 = vpop.f32.mrb[6].mxu1 }
 0x28d   : > { %v2916_v11 = vpop.f32.mrb[7].mxu1  ;;  %v846_v18 = vsel %vm842_vm2, %v791_v10, -inf }
 0x292   : > { %v835_v12 = vpop.f32.mrb[8].mxu0 }
 0x293   : > { %v2921_v13 = vpop.f32.mrb[9].mxu0  ;;  %v849_v14 = vsel %vm842_vm2, %v835_v12, -inf }
 0x294   : > { %850 = vmax.xlane.f32.xlu0 %v849_v14  ;;  %v838_v15 = vpop.f32.mrb[10].mxu0 }
 0x295   : > { %v2922_v16 = vpop.f32.mrb[11].mxu0  ;;  %v852_v17 = vsel %vm842_vm2, %v838_v15, -inf }
 0x298   : > { %853 = vmax.xlane.f32.xlu0 %v852_v17 }
 0x2ae   : > { %1040 = vrot.lane.b32.xlu0 %v4017_v62, %s3614_s27 }
 0x2cd   : > { %847 = vmax.xlane.f32.xlu0 %v846_v18 }
 0x321   : > { %v851_v19 = vpop.xlane.xlu0 %850 }
 0x322   : > { %v857_v20 = vsub.f32 %v835_v12, %v851_v19 }
 0x324   : > { %v863_v21 = vmul.f32 1.442695, %v857_v20 }
 0x325   : > { %v854_v22 = vpop.xlane.xlu0 %853 }
 0x326   : > { %3265 = vpow2.f32 %v863_v21  ;;  %v858_v23 = vsub.f32 %v838_v15, %v854_v22 }
 0x328   : > { %v865_v24 = vmul.f32 1.442695, %v858_v23 }
 0x329   : > { %v1041_v29 = vpop.permute.xlu0 %1040 }
 0x32a   : > { %3267 = vpow2.f32 %v865_v24  ;;  %v1046_v44 = vsel %vm747_vm1, %v1041_v29, 0 }
 0x330   : > { %v3266_v25 = vpop.eup %3265 }
 0x331   : > { %v873_v26 = vsel %vm842_vm2, %v3266_v25, 0.0 }
 0x332   : > { %874 = vadd.xlane.f32.xlu1 %v873_v26 }
 0x334   : > { %v3268_v27 = vpop.eup %3267 }
 0x335   : > { %v876_v28 = vsel %vm842_vm2, %v3268_v27, 0.0 }
 0x336   : > { %877 = vadd.xlane.f32.xlu1 %v876_v28 }
 0x347   : > { %1037 = vrot.lane.b32.xlu1 %v4015_v59, %s3614_s27 }
 0x35a   : > { %v848_v30 = vpop.xlane.xlu0 %847 }
 0x35b   : > { %v856_v31 = vsub.f32 %v791_v10, %v848_v30 }
 0x35d   : > { %v861_v32 = vmul.f32 1.442695, %v856_v31 }
 0x35f   : > { %3269 = vpow2.f32 %v861_v32 }
 0x369   : > { %v3270_v34 = vpop.eup %3269 }
 0x36a   : > { %v870_v36 = vsel %vm842_vm2, %v3270_v34, 0.0 }
 0x36b   : > { %844 = vmax.xlane.f32.xlu1 %v843_v33 }
 0x36f   : > { %871 = vadd.xlane.f32.xlu1 %v870_v36 }
 0x380   : > { %984 = vrot.lane.b32.xlu1 %v4007_v46, %s3614_s27 }
 0x3bf   : > { %v875_v37 = vpop.xlane.xlu1 %874 }
 0x3c0   : > { %3271 = vrcp.f32 %v875_v37 }
 0x3c3   : > { %v878_v38 = vpop.xlane.xlu1 %877 }
 0x3c4   : > { %3273 = vrcp.f32 %v878_v38 }
 0x3c7   : > { %v1038_v45 = vpop.permute.xlu1 %1037 }
 0x3ca   : > { %v3272_v39 = vpop.eup %3271 }
 0x3cb   : > { %v885_v41 = vmul.f32 %v3272_v39, %v3266_v25 }
 0x3ce   : > { %v3274_v40 = vpop.eup %3273 }
 0x3cf   : > { %v886_v42 = vmul.f32 %v3274_v40, %v3268_v27 }
 0x3d1   : > { %v888_v43 = vpack.c.bf16 %v886_v42, %v885_v41 }
 0x3d3   : > { %2932 = vmatmul.mubr.msk.bf16.vlgmr.msra.gmra.mrb[12].mxu0 %vm842_vm2, %v888_v43 }
 0x3d4   : > { %2942 = vmatpush3.bf16.xpose.msra.mxu0 %v1046_v44  ;;  %2943 = vmatprep.mubr.msk.bf16.mxu0 %vm3613_vm0, %v3612_v35 }
 0x3d5   : > { %2953 = vmatprep.subr.bf16.mxu0 %v3612_v35 }
 0x3db   : > { %2944 = vmatmul.mubr.msk.bf16.vlgmr.msra.gmra.mrb[16].mxu0 %vm747_vm1, %v1038_v45 }
 0x3dc   : > { %2955 = vmatprep.mubr.msk.bf16.mxu0 %vm3613_vm0, %v3612_v35 }
 0x3f8   : > { %v845_v48 = vpop.xlane.xlu1 %844 }
 0x3f9   : > { %v855_v49 = vsub.f32 %v788_v8, %v845_v48 }
 0x3fb   : > { %v859_v50 = vmul.f32 1.442695, %v855_v49 }
 0x3fc   : > { %v872_v53 = vpop.xlane.xlu1 %871 }
 0x3fd   : > { %3275 = vpow2.f32 %v859_v50 }
 0x3fe   : > { %3277 = vrcp.f32 %v872_v53 }
 0x400   : > { %v985_v8 = vpop.permute.xlu1 %984 }
 0x407   : > { %v3276_v51 = vpop.eup %3275 }
 0x408   : > { %v867_v52 = vsel %vm842_vm2, %v3276_v51, 0.0  ;;  %v3278_v55 = vpop.eup %3277 }
 0x409   : > { %868 = vadd.xlane.f32.xlu0 %v867_v52  ;;  %v884_v57 = vmul.f32 %v3278_v55, %v3270_v34 }
 0x41f   : > { %987 = vrot.lane.b32.xlu0 %v4009_v47, %s3614_s27 }
 0x496   : > { %v869_v54 = vpop.xlane.xlu0 %868 }
 0x497   : > { %3279 = vrcp.f32 %v869_v54 }
 0x49a   : > { %v988_v60 = vpop.permute.xlu0 %987 }
 0x49b   : > { %v993_v63 = vsel %vm747_vm1, %v988_v60, 0 }
 0x4a1   : > { %v3280_v56 = vpop.eup %3279 }
 0x4a2   : > { %v883_v58 = vmul.f32 %v3280_v56, %v3276_v51 }
 0x4a4   : > { %v887_v61 = vpack.c.bf16 %v884_v57, %v883_v58 }
 0x4a6   : > { %2926 = vmatmul.mubr.msk.bf16.vlgmr.msra.gmra.mrb[8].mxu1 %vm842_vm2, %v887_v61  ;;  %v4064_v0 = vpop.f32.mrb[12].mxu0 }
 0x4a7   : > { %2936 = vmatpush3.bf16.xpose.msra.mxu1 %v993_v63  ;;  %v2933_v1 = vpop.f32.mrb[13].mxu0  ;;  %2937 = vmatprep.mubr.msk.bf16.mxu1 %vm3613_vm0, %v3612_v35 }
 0x4a8   : > { %v4068_v2 = vpop.f32.mrb[14].mxu0  ;;  %2947 = vmatprep.subr.bf16.mxu1 %v3612_v35 }
 0x4a9   : > { %v978_v3 = vpack.c.bf16 %v4068_v2, %v4064_v0  ;;  %v2934_v4 = vpop.f32.mrb[15].mxu0 }
 0x4ae   : > { %2938 = vmatmul.mubr.msk.bf16.vlgmr.msra.gmra.mrb[12].mxu1 %vm747_vm1, %v985_v8  ;;  %v1082_v9 = vpop.f32.mrb[16].mxu0 }
 0x4af   : > { %v2945_v10 = vpop.f32.mrb[17].mxu0  ;;  %v1095_v11 = vsel %vm842_vm2, %v1082_v9, -inf  ;;  %2949 = vmatprep.mubr.msk.bf16.mxu1 %vm3613_vm0, %v3612_v35 }
 0x4b0   : > { %1096 = vmax.xlane.f32.xlu1 %v1095_v11  ;;  %v1085_v12 = vpop.f32.mrb[18].mxu0 }
 0x4b1   : > { %v2946_v13 = vpop.f32.mrb[19].mxu0  ;;  %v1098_v14 = vsel %vm842_vm2, %v1085_v12, -inf }
 0x4b2   : > { %1099 = vmax.xlane.f32.xlu0 %v1098_v14 }
 0x4c1   : > { %1373 = vrot.lane.b32.xlu1 %v4009_v47, %s3615_s10 }
 0x53d   : > { %v1097_v15 = vpop.xlane.xlu1 %1096 }
 0x53e   : > { %v1103_v16 = vsub.f32 %v1082_v9, %v1097_v15 }
 0x53f   : > { %v1100_v17 = vpop.xlane.xlu0 %1099 }
 0x540   : > { %v1109_v18 = vmul.f32 1.442695, %v1103_v16  ;;  %v1104_v19 = vsub.f32 %v1085_v12, %v1100_v17 }
 0x541   : > { %v1374_v37 = vpop.permute.xlu1 %1373 }
 0x542   : > { %3281 = vpow2.f32 %v1109_v18  ;;  %v1111_v20 = vmul.f32 1.442695, %v1104_v19  ;;  %v1379_v49 = vsel %vm747_vm1, %v1374_v37, 0  ;;  %v3218_v37 = vld [vmem:[%s3934_s12 + $0x18] sm:$0xff]  }
 0x544   : > { %3283 = vpow2.f32 %v1111_v20 }
 0x54c   : > { %v3282_v21 = vpop.eup %3281 }
 0x54d   : > { %v1119_v22 = vsel %vm842_vm2, %v3282_v21, 0.0 }
 0x54e   : > { %v3284_v23 = vpop.eup %3283  ;;  %1120 = vadd.xlane.f32.xlu0 %v1119_v22 }
 0x54f   : > { %v1122_v24 = vsel %vm842_vm2, %v3284_v23, 0.0 }
 0x550   : > { %1123 = vadd.xlane.f32.xlu1 %v1122_v24 }
 0x561   : > { %1371 = vrot.lane.b32.xlu1 %v4007_v46, %s3615_s10 }
 0x564   : > { %1184 = vrot.lane.b32.xlu0 %v4023_v5, %s3614_s27 }
 0x565   : > { %1424 = vrot.lane.b32.xlu1 %v4017_v62, %s3615_s10 }
 0x568   : > { %1422 = vrot.lane.b32.xlu0 %v4015_v59, %s3615_s10 }
 0x579   : > { %v4090_v25 = vpop.f32.mrb[8].mxu1 }
 0x57a   : > { %v2927_v26 = vpop.f32.mrb[9].mxu1 }
 0x57b   : > { %v4092_v27 = vpop.f32.mrb[10].mxu1 }
 0x57c   : > { %v977_v28 = vpack.c.bf16 %v4092_v27, %v4090_v25  ;;  %v2928_v29 = vpop.f32.mrb[11].mxu1 }
 0x581   : > { %v1029_v30 = vpop.f32.mrb[12].mxu1 }
 0x582   : > { %v2939_v31 = vpop.f32.mrb[13].mxu1  ;;  %v1089_v36 = vsel %vm842_vm2, %v1029_v30, -inf }
 0x583   : > { %v1032_v32 = vpop.f32.mrb[14].mxu1 }
 0x584   : > { %v2940_v33 = vpop.f32.mrb[15].mxu1  ;;  %v1092_v34 = vsel %vm842_vm2, %v1032_v32, -inf }
 0x587   : > { %1093 = vmax.xlane.f32.xlu0 %v1092_v34 }
 0x589   : > { %1090 = vmax.xlane.f32.xlu1 %v1089_v36  ;;  %v3217_v36 = vld [vmem:[%s3934_s12 + $0x10] sm:$0xff]  }
 0x59a   : > { %1136 = vrot.lane.b32.xlu1 %v4027_v7, %s3614_s27 }
 0x5db   : > { %v1121_v38 = vpop.xlane.xlu0 %1120 }
 0x5dc   : > { %3285 = vrcp.f32 %v1121_v38  ;;  %v3219_v38 = vld [vmem:[%s3934_s12] sm:$0xff]  }
 0x5dd   : > { %v1124_v39 = vpop.xlane.xlu1 %1123 }
 0x5de   : > { %3287 = vrcp.f32 %v1124_v39 }
 0x5df   : > { %v1185_v40 = vpop.permute.xlu0 %1184 }
 0x5e0   : > { %2954 = vmatpush3.bf16.msra.mxu0 %v1185_v40 }
 0x5e1   : > { %2975 = vmatprep.subr.bf16.mxu0 %v3612_v35  ;;  %v1372_v48 = vpop.permute.xlu1 %1371 }
 0x5e3   : > { %v1423_v52 = vpop.permute.xlu0 %1422 }
 0x5e5   : > { %v1425_v50 = vpop.permute.xlu1 %1424 }
 0x5e6   : > { %v3286_v41 = vpop.eup %3285  ;;  %v1430_v51 = vsel %vm747_vm1, %v1425_v50, 0 }
 0x5e7   : > { %v1131_v43 = vmul.f32 %v3286_v41, %v3282_v21 }
 0x5e8   : > { %v3288_v42 = vpop.eup %3287 }
 0x5e9   : > { %v1132_v44 = vmul.f32 %v3288_v42, %v3284_v23 }
 0x5eb   : > { %v1134_v45 = vpack.c.bf16 %v1132_v44, %v1131_v43 }
 0x5ed   : > { %2956 = vmatmul.mubr.msk.bf16.vlgmr.msra.gmra.mrb[20].mxu0 %vm842_vm2, %v1134_v45 }
 0x5ee   : > { %2976 = vmatpush3.bf16.xpose.msra.mxu0 %v1379_v49  ;;  %2977 = vmatprep.mubr.msk.bf16.mxu0 %vm3613_vm0, %v3612_v35 }
 0x5ef   : > { %2981 = vmatprep.subr.bf16.mxu0 %v3612_v35 }
 0x5f5   : > { %2978 = vmatmul.mubr.msk.bf16.vlgmr.msra.gmra.mrb[24].mxu0 %vm747_vm1, %v1372_v48 }
 0x5f6   : > { %2982 = vmatpush3.bf16.xpose.msra.mxu0 %v1430_v51  ;;  %2983 = vmatprep.mubr.msk.bf16.mxu0 %vm3613_vm0, %v3612_v35 }
 0x5f7   : > { %2993 = vmatprep.subr.bf16.mxu0 %v3612_v35 }
 0x5fd   : > { %2984 = vmatmul.mubr.msk.bf16.vlgmr.msra.gmra.mrb[28].mxu0 %vm747_vm1, %v1423_v52 }
 0x5fe   : > { %2995 = vmatprep.mubr.msk.bf16.mxu0 %vm3613_vm0, %v3612_v35 }
 0x614   : > { %v1094_v53 = vpop.xlane.xlu0 %1093 }
 0x615   : > { %v1102_v54 = vsub.f32 %v1032_v32, %v1094_v53 }
 0x616   : > { %v1091_v55 = vpop.xlane.xlu1 %1090 }
 0x617   : > { %v1101_v56 = vsub.f32 %v1029_v30, %v1091_v55  ;;  %v1107_v57 = vmul.f32 1.442695, %v1102_v54 }
 0x619   : > { %v1105_v58 = vmul.f32 1.442695, %v1101_v56 }
 0x61a   : > { %v1137_v60 = vpop.permute.xlu1 %1136 }
 0x61b   : > { %3289 = vpow2.f32 %v1105_v58  ;;  %2948 = vmatpush3.bf16.msra.mxu1 %v1137_v60 }
 0x61c   : > { %3291 = vpow2.f32 %v1107_v57  ;;  %2959 = vmatprep.subr.bf16.mxu1 %v3217_v36 }
 0x625   : > { %v3290_v61 = vpop.eup %3289 }
 0x626   : > { %v1113_v63 = vsel %vm842_vm2, %v3290_v61, 0.0  ;;  %v3292_v1 = vpop.eup %3291 }
 0x627   : > { %1114 = vadd.xlane.f32.xlu0 %v1113_v63  ;;  %v1116_v4 = vsel %vm842_vm2, %v3292_v1, 0.0 }
 0x62b   : > { %1117 = vadd.xlane.f32.xlu0 %v1116_v4 }
 0x6b4   : > { %v1115_v8 = vpop.xlane.xlu0 %1114 }
 0x6b5   : > { %3293 = vrcp.f32 %v1115_v8 }
 0x6b8   : > { %v1118_v9 = vpop.xlane.xlu0 %1117 }
 0x6b9   : > { %3295 = vrcp.f32 %v1118_v9 }
 0x6bf   : > { %v3294_v11 = vpop.eup %3293 }
 0x6c0   : > { %v4116_v10 = vpop.f32.mrb[20].mxu0  ;;  %v1129_v17 = vmul.f32 %v3294_v11, %v3290_v61  ;;  %v3220_v11 = vld [vmem:[%s3934_s12 + $0x8] sm:$0xff]  }
 0x6c1   : > { %v2957_v12 = vpop.f32.mrb[21].mxu0 }
 0x6c2   : > { %v4118_v13 = vpop.f32.mrb[22].mxu0 }
 0x6c3   : > { %v3296_v14 = vpop.eup %3295  ;;  %v1232_v15 = vpack.c.bf16 %v4118_v13, %v4116_v10  ;;  %v2958_v16 = vpop.f32.mrb[23].mxu0 }
 0x6c4   : > { %v1130_v18 = vmul.f32 %v3296_v14, %v3292_v1 }
 0x6c6   : > { %v1133_v19 = vpack.c.bf16 %v1130_v18, %v1129_v17 }
 0x6c8   : > { %2950 = vmatmul.mubr.msk.bf16.vlgmr.msra.gmra.mrb[16].mxu1 %vm842_vm2, %v1133_v19  ;;  %v1415_v20 = vpop.f32.mrb[24].mxu0 }
 0x6c9   : > { %v2979_v21 = vpop.f32.mrb[25].mxu0  ;;  %v1473_v22 = vsel %vm842_vm2, %v1415_v20, -inf  ;;  %2960 = vmatpush3.bf16.msra.mxu1 %v3217_v36 }
 0x6ca   : > { %1474 = vmax.xlane.f32.xlu0 %v1473_v22  ;;  %v1418_v23 = vpop.f32.mrb[26].mxu0  ;;  %2961 = vmatprep.subr.bf16.mxu1 %v3218_v37  ;;  %v3222_v22 = vld [vmem:[%s3934_s12 + $0x28] sm:$0xff]  }
 0x6cb   : > { %v2980_v24 = vpop.f32.mrb[27].mxu0  ;;  %v1476_v26 = vsel %vm842_vm2, %v1418_v23, -inf }
 0x6cd   : > { %2962 = vmatpush3.bf16.msra.mxu1 %v3218_v37 }
 0x6ce   : > { %1477 = vmax.xlane.f32.xlu0 %v1476_v26  ;;  %2967 = vmatprep.subr.bf16.mxu1 %v3219_v38 }
 0x6d0   : > { %v1466_v29 = vpop.f32.mrb[28].mxu0 }
 0x6d1   : > { %v2985_v30 = vpop.f32.mrb[29].mxu0  ;;  %v1479_v31 = vsel %vm842_vm2, %v1466_v29, -inf }
 0x6d2   : > { %1480 = vmax.xlane.f32.xlu0 %v1479_v31  ;;  %v1469_v32 = vpop.f32.mrb[30].mxu0 }
 0x6d3   : > { %v2986_v33 = vpop.f32.mrb[31].mxu0  ;;  %v1482_v34 = vsel %vm842_vm2, %v1469_v32, -inf }
 0x6d6   : > { %1483 = vmax.xlane.f32.xlu0 %v1482_v34 }
 0x757   : > { %v1475_v39 = vpop.xlane.xlu0 %1474 }
 0x758   : > { %v1485_v40 = vsub.f32 %v1415_v20, %v1475_v39 }
 0x75a   : > { %v1489_v41 = vmul.f32 1.442695, %v1485_v40 }
 0x75b   : > { %v1478_v42 = vpop.xlane.xlu0 %1477 }
 0x75c   : > { %3297 = vpow2.f32 %v1489_v41  ;;  %v1486_v43 = vsub.f32 %v1418_v23, %v1478_v42 }
 0x75e   : > { %v1491_v44 = vmul.f32 1.442695, %v1486_v43 }
 0x75f   : > { %v1481_v45 = vpop.xlane.xlu0 %1480 }
 0x760   : > { %3299 = vpow2.f32 %v1491_v44  ;;  %v1487_v48 = vsub.f32 %v1466_v29, %v1481_v45 }
 0x762   : > { %v1493_v49 = vmul.f32 1.442695, %v1487_v48 }
 0x763   : > { %v1484_v50 = vpop.xlane.xlu0 %1483 }
 0x764   : > { %3301 = vpow2.f32 %v1493_v49  ;;  %v1488_v51 = vsub.f32 %v1469_v32, %v1484_v50 }
 0x766   : > { %v3298_v52 = vpop.eup %3297  ;;  %v1495_v53 = vmul.f32 1.442695, %v1488_v51 }
 0x767   : > { %v1497_v54 = vsel %vm842_vm2, %v3298_v52, 0.0 }
 0x768   : > { %3303 = vpow2.f32 %v1495_v53  ;;  %1498 = vadd.xlane.f32.xlu1 %v1497_v54 }
 0x76a   : > { %v3300_v55 = vpop.eup %3299 }
 0x76b   : > { %v1500_v56 = vsel %vm842_vm2, %v3300_v55, 0.0 }
 0x76c   : > { %1501 = vadd.xlane.f32.xlu0 %v1500_v56 }
 0x76e   : > { %v3302_v57 = vpop.eup %3301 }
 0x76f   : > { %v1503_v58 = vsel %vm842_vm2, %v3302_v57, 0.0 }
 0x770   : > { %1504 = vadd.xlane.f32.xlu0 %v1503_v58 }
 0x772   : > { %v3304_v60 = vpop.eup %3303 }
 0x773   : > { %v1506_v61 = vsel %vm842_vm2, %v3304_v60, 0.0 }
 0x774   : > { %1507 = vadd.xlane.f32.xlu0 %v1506_v61 }
 0x779   : > { %1566 = vrot.lane.b32.xlu1 %v4023_v5, %s3615_s10 }
 0x78a   : > { %1519 = vrot.lane.b32.xlu0 %v4027_v7, %s3615_s10 }
 0x78e   : > { %1692 = vrot.lane.b32.xlu0 %v4009_v47, %s3616_s30 }
 0x792   : > { %1743 = vrot.lane.b32.xlu0 %v4017_v62, %s3616_s30 }
 0x796   : > { %1690 = vrot.lane.b32.xlu0 %v4007_v46, %s3616_s30 }
 0x79a   : > { %1741 = vrot.lane.b32.xlu0 %v4015_v59, %s3616_s30 }
 0x79b   : > { %v1176_v63 = vpop.f32.mrb[16].mxu1 }
 0x79c   : > { %v2951_v1 = vpop.f32.mrb[17].mxu1 }
 0x79d   : > { %v1179_v4 = vpop.f32.mrb[18].mxu1 }
 0x79e   : > { %v1231_v8 = vpack.c.bf16 %v1179_v4, %v1176_v63  ;;  %v2952_v9 = vpop.f32.mrb[19].mxu1 }
 0x7a0   : > { %2963 = vmatprep.mubr.msk.bf16.mxu1 %vm747_vm1, %v1231_v8 }
 0x7a1   : > { %2964 = vmatmul.mubr.msk.bf16.vlgmr.msra.gmra.mrb[20].mxu1 %vm747_vm1, %v1232_v15 }
 0x7a2   : > { %2971 = vmatprep.mubr.msk.bf16.mxu1 %vm747_vm1, %v977_v28  ;;  %2968 = vmatpush3.bf16.msra.mxu1 %v3219_v38  ;;  %v3221_v28 = vld [vmem:[%s3934_s12 + $0x20] sm:$0xff]  }
 0x7a3   : > { %2969 = vmatprep.subr.bf16.mxu1 %v3220_v11 }
 0x7a6   : > { %2970 = vmatpush3.bf16.msra.mxu1 %v3220_v11 }
 0x7a7   : > { %2987 = vmatprep.subr.bf16.mxu1 %v3612_v35 }
 0x7ad   : > { %2972 = vmatmul.mubr.msk.bf16.vlgmr.msra.gmra.mrb[20].mxu1 %vm747_vm1, %v978_v3 }
 0x7ae   : > { %2989 = vmatprep.mubr.msk.bf16.mxu1 %vm3613_vm0, %v3612_v35 }
 0x7f5   : > { %v1499_v46 = vpop.xlane.xlu1 %1498 }
 0x7f6   : > { %3305 = vrcp.f32 %v1499_v46 }
 0x7f9   : > { %v1567_v47 = vpop.permute.xlu1 %1566  ;;  %v1502_v59 = vpop.xlane.xlu0 %1501 }
 0x7fa   : > { %3307 = vrcp.f32 %v1502_v59  ;;  %2994 = vmatpush3.bf16.msra.mxu0 %v1567_v47 }
 0x7fb   : > { %3007 = vmatprep.subr.bf16.mxu0 %v3612_v35 }
 0x7fd   : > { %v1505_v62 = vpop.xlane.xlu0 %1504 }
 0x7fe   : > { %3309 = vrcp.f32 %v1505_v62 }
 0x800   : > { %v3306_v27 = vpop.eup %3305 }
 0x801   : > { %v1508_v25 = vpop.xlane.xlu0 %1507  ;;  %v1513_v2 = vmul.f32 %v3306_v27, %v3298_v52 }
 0x802   : > { %3311 = vrcp.f32 %v1508_v25 }
 0x804   : > { %v3308_v0 = vpop.eup %3307 }
 0x805   : > { %v1514_v3 = vmul.f32 %v3308_v0, %v3300_v55  ;;  %v1520_v10 = vpop.permute.xlu0 %1519 }
 0x806   : > { %2988 = vmatpush3.bf16.msra.mxu1 %v1520_v10 }
 0x807   : > { %v1517_v12 = vpack.c.bf16 %v1514_v3, %v1513_v2  ;;  %2999 = vmatprep.subr.bf16.mxu1 %v3221_v28 }
 0x808   : > { %v3310_v13 = vpop.eup %3309 }
 0x809   : > { %2990 = vmatmul.mubr.msk.bf16.vlgmr.msra.gmra.mrb[24].mxu1 %vm842_vm2, %v1517_v12  ;;  %v1693_v15 = vpop.permute.xlu0 %1692  ;;  %v1515_v16 = vmul.f32 %v3310_v13, %v3302_v57 }
 0x80a   : > { %3000 = vmatpush3.bf16.msra.mxu1 %v3221_v28  ;;  %v1698_v19 = vsel %vm747_vm1, %v1693_v15, 0 }
 0x80b   : > { %3001 = vmatprep.subr.bf16.mxu1 %v3222_v22 }
 0x80c   : > { %v3312_v14 = vpop.eup %3311 }
 0x80d   : > { %v1516_v17 = vmul.f32 %v3312_v14, %v3304_v60  ;;  %v1744_v20 = vpop.permute.xlu0 %1743 }
 0x80e   : > { %3002 = vmatpush3.bf16.msra.mxu1 %v3222_v22  ;;  %v1749_v37 = vsel %vm747_vm1, %v1744_v20, 0  ;;  %v3223_v20 = vld [vmem:[%s3934_s12 + $0x30] sm:$0xff]  }
 0x80f   : > { %v1518_v18 = vpack.c.bf16 %v1516_v17, %v1515_v16  ;;  %3013 = vmatprep.subr.bf16.mxu1 %v3612_v35 }
 0x811   : > { %2996 = vmatmul.mubr.msk.bf16.vlgmr.msra.gmra.mrb[32].mxu0 %vm842_vm2, %v1518_v18  ;;  %v1691_v21 = vpop.permute.xlu0 %1690 }
 0x812   : > { %3008 = vmatpush3.bf16.xpose.msra.mxu0 %v1698_v19  ;;  %3009 = vmatprep.mubr.msk.bf16.mxu0 %vm3613_vm0, %v3612_v35 }
 0x813   : > { %3019 = vmatprep.subr.bf16.mxu0 %v3612_v35 }
 0x815   : > { %v1742_v44 = vpop.permute.xlu0 %1741 }
 0x819   : > { %3010 = vmatmul.mubr.msk.bf16.vlgmr.msra.gmra.mrb[36].mxu0 %vm747_vm1, %v1691_v21  ;;  %v3224_v21 = vld [vmem:[%s3934_s12 + $0x38] sm:$0xff]   ;;  %s2804_s12 = sshll.u32 %s3587_s28, 9  ;;  %s3469_s28 = scalar_lea.vmem %s4293_s18, 512 }
 0x81a   : > { %3021 = vmatprep.mubr.msk.bf16.mxu0 %vm3613_vm0, %v3612_v35  ;;  %p3470_p1 = scmp.ne.s32.totalorder %s4293_s18, %s3469_s28  ;;  %p3477_p5 = scmp.lt.s32.totalorder %s3475_s19, %s3469_s28 }
 0x81c   : > { %p3471_p13 = pnand %p3470_p1, %p4406_p2  ;;  %p3478_p11 = por %p3477_p5, %p3476_p10 }
 0x81e   : > { %p3472_p7 = pneg %p3471_p13 }
 0x820   : > { %p3479_p12 = pnand %p3478_p11, %p3472_p7 }
 0x8dc   : > { %v1559_v23 = vpop.f32.mrb[24].mxu1 }
 0x8dd   : > { %v2991_v24 = vpop.f32.mrb[25].mxu1 }
 0x8de   : > { %v1562_v26 = vpop.f32.mrb[26].mxu1 }
 0x8df   : > { %v1613_v29 = vpack.c.bf16 %v1562_v26, %v1559_v23  ;;  %v2992_v30 = vpop.f32.mrb[27].mxu1 }
 0x8e1   : > { %3003 = vmatprep.mubr.msk.bf16.mxu1 %vm747_vm1, %v1613_v29 }
 0x8e4   : > { %v1606_v31 = vpop.f32.mrb[32].mxu0 }
 0x8e5   : > { %v2997_v32 = vpop.f32.mrb[33].mxu0 }
 0x8e6   : > { %v1609_v33 = vpop.f32.mrb[34].mxu0 }
 0x8e7   : > { %v1614_v34 = vpack.c.bf16 %v1609_v33, %v1606_v31  ;;  %v2998_v36 = vpop.f32.mrb[35].mxu0 }
 0x8e8   : > { %v2009_v36 = vld [vmem:[%s3960_s24 + $0x3] ss:$0 sm:$0xff] }
 0x8e9   : > { %3004 = vmatmul.mubr.msk.bf16.vlgmr.msra.gmra.mrb[20].mxu1 %vm747_vm1, %v1614_v34 }
 0x8ea   : > { %3014 = vmatpush3.bf16.xpose.msra.mxu1 %v1749_v37  ;;  %3015 = vmatprep.mubr.msk.bf16.mxu1 %vm3613_vm0, %v3612_v35 }
 0x8eb   : > { %3025 = vmatprep.subr.bf16.mxu1 %v3612_v35 }
 0x8ec   : > { %v1734_v38 = vpop.f32.mrb[36].mxu0 }
 0x8ed   : > { %v3011_v39 = vpop.f32.mrb[37].mxu0  ;;  %v1792_v40 = vsel %vm842_vm2, %v1734_v38, -inf }
 0x8ee   : > { %1793 = vmax.xlane.f32.xlu0 %v1792_v40  ;;  %v1737_v41 = vpop.f32.mrb[38].mxu0 }
 0x8ef   : > { %v3012_v42 = vpop.f32.mrb[39].mxu0  ;;  %v1795_v43 = vsel %vm842_vm2, %v1737_v41, -inf }
 0x8f0   : > { %1796 = vmax.xlane.f32.xlu1 %v1795_v43 }
 0x8f1   : > { %3016 = vmatmul.mubr.msk.bf16.vlgmr.msra.gmra.mrb[28].mxu1 %vm747_vm1, %v1742_v44  ;;  %v3345_v44 = vld [vmem:[%s3962_s17] sm:$0xff] }
 0x8f2   : > { %3027 = vmatprep.mubr.msk.bf16.mxu1 %vm3613_vm0, %v3612_v35 }
 0x97b   : > { %v1794_v45 = vpop.xlane.xlu0 %1793 }
 0x97c   : > { %v1804_v48 = vsub.f32 %v1734_v38, %v1794_v45 }
 0x97d   : > { %v1797_v52 = vpop.xlane.xlu1 %1796 }
 0x97e   : > { %v1808_v49 = vmul.f32 1.442695, %v1804_v48  ;;  %v1805_v53 = vsub.f32 %v1737_v41, %v1797_v52 }
 0x980   : > { %3313 = vpow2.f32 %v1808_v49  ;;  %v1810_v54 = vmul.f32 1.442695, %v1805_v53  ;;  %v3346_v49 = vld [vmem:[%s3962_s17 + $0x8] sm:$0xff]  ;;  %v3348_v53 = vld [vmem:[%s3962_s17 + $0x18] sm:$0xff] }
 0x982   : > { %3315 = vpow2.f32 %v1810_v54 }
 0x98a   : > { %v3314_v50 = vpop.eup %3313 }
 0x98b   : > { %v1816_v51 = vsel %vm842_vm2, %v3314_v50, 0.0 }
 0x98c   : > { %1817 = vadd.xlane.f32.xlu1 %v1816_v51  ;;  %v3316_v61 = vpop.eup %3315  ;;  %v3347_v51 = vld [vmem:[%s3962_s17 + $0x10] sm:$0xff] }
 0x98d   : > { %v1819_v63 = vsel %vm842_vm2, %v3316_v61, 0.0 }
 0x9c4   : > { %v1785_v55 = vpop.f32.mrb[28].mxu1 }
 0x9c5   : > { %v3017_v56 = vpop.f32.mrb[29].mxu1  ;;  %v1798_v57 = vsel %vm842_vm2, %v1785_v55, -inf }
 0x9c6   : > { %v1788_v58 = vpop.f32.mrb[30].mxu1  ;;  %1799 = vmax.xlane.f32.xlu0 %v1798_v57  ;;  %v3227_v56 = vld [vmem:[%s3940_s11 + $0x4] ss:$8 sps:$4 sm:$0xff]   ;;  %v3230_v57 = vld [vmem:[%s3940_s11 + $0x14] ss:$8 sps:$4 sm:$0xff]  }
 0x9c7   : > { %v3018_v60 = vpop.f32.mrb[31].mxu1  ;;  %v1801_v35 = vsel %vm842_vm2, %v1788_v58, -inf }
 0x9ca   : > { %1802 = vmax.xlane.f32.xlu0 %v1801_v35 }
 0x9ce   : > { %1820 = vadd.xlane.f32.xlu0 %v1819_v63 }
 0xa19   : > { %v1818_v28 = vpop.xlane.xlu1 %1817 }
 0xa53   : > { %v1800_v1 = vpop.xlane.xlu0 %1799 }
 0xa54   : > { %v1806_v4 = vsub.f32 %v1785_v55, %v1800_v1  ;;  %v3225_v55 = vld [vmem:[%s3940_s11] ss:$8 sps:$4 sm:$0xff]  }
 0xa56   : > { %v1812_v8 = vmul.f32 1.442695, %v1806_v4 }
 0xa57   : > { %v1803_v9 = vpop.xlane.xlu0 %1802 }
 0xa58   : > { %3317 = vpow2.f32 %v1812_v8  ;;  %v1807_v11 = vsub.f32 %v1788_v58, %v1803_v9  ;;  %v3228_v58 = vld [vmem:[%s3940_s11 + $0x10] ss:$8 sps:$4 sm:$0xff]  }
 0xa5a   : > { %v1814_v46 = vmul.f32 1.442695, %v1807_v11 }
 0xa5b   : > { %v1821_v27 = vpop.xlane.xlu0 %1820 }
 0xa5c   : > { %3319 = vpow2.f32 %v1814_v46 }
 0xa5d   : > { %3321 = vrcp.f32 %v1821_v27 }
 0xa5e   : > { %3323 = vrcp.f32 %v1818_v28 }
 0xa62   : > { %v3318_v47 = vpop.eup %3317 }
 0xa63   : > { %v1822_v59 = vsel %vm842_vm2, %v3318_v47, 0.0 }
 0xa64   : > { %1823 = vadd.xlane.f32.xlu1 %v1822_v59 }
 0xa66   : > { %v3320_v62 = vpop.eup %3319 }
 0xa67   : > { %v1825_v25 = vsel %vm842_vm2, %v3320_v62, 0.0  ;;  %v3322_v0 = vpop.eup %3321 }
 0xa68   : > { %1826 = vadd.xlane.f32.xlu0 %v1825_v25  ;;  %v3324_v3 = vpop.eup %3323  ;;  %v1833_v10 = vmul.f32 %v3322_v0, %v3316_v61  ;;  %v3233_v0 = vld [vmem:[%s3940_s11 + $0x24] ss:$8 sps:$4 sm:$0xff]  }
 0xa69   : > { %v1832_v12 = vmul.f32 %v3324_v3, %v3314_v50  ;;  %v3236_v3 = vld [vmem:[%s3940_s11 + $0x34] ss:$8 sps:$4 sm:$0xff]  }
 0xa75   : > { %1838 = vrot.lane.b32.xlu1 %v4027_v7, %s3616_s30  ;;  %v1836_v7 = vpack.c.bf16 %v1833_v10, %v1832_v12  ;;  %v3234_v10 = vld [vmem:[%s3940_s11 + $0x30] ss:$8 sps:$4 sm:$0xff]   ;;  %v3239_v12 = vld [vmem:[%s3940_s11 + $0x44] ss:$8 sps:$4 sm:$0xff]  }
 0xa7e   : > { %1885 = vrot.lane.b32.xlu0 %v4023_v5, %s3616_s30 }
 0xaf1   : > { %v1824_v2 = vpop.xlane.xlu1 %1823 }
 0xaf2   : > { %3325 = vrcp.f32 %v1824_v2  ;;  %v3231_v2 = vld [vmem:[%s3940_s11 + $0x20] ss:$8 sps:$4 sm:$0xff]  }
 0xaf5   : > { %v1827_v13 = vpop.xlane.xlu0 %1826  ;;  %v1839_v14 = vpop.permute.xlu1 %1838 }
 0xaf6   : > { %3327 = vrcp.f32 %v1827_v13  ;;  %3020 = vmatpush3.bf16.msra.mxu0 %v1839_v14  ;;  %v3237_v13 = vld [vmem:[%s3940_s11 + $0x40] ss:$8 sps:$4 sm:$0xff]   ;;  %v3242_v14 = vld [vmem:[%s3940_s11 + $0x54] ss:$8 sps:$4 sm:$0xff]  }
 0xaf7   : > { %2184 = vmatprep.subr.bf16.mxu0 %v3227_v56 }
 0xaf9   : > { %v1886_v15 = vpop.permute.xlu0 %1885  ;;  %3022 = vmatmul.mubr.msk.bf16.vlgmr.msra.gmra.mrb[40].mxu0 %vm842_vm2, %v1836_v7  ;;  %v3240_v7 = vld [vmem:[%s3940_s11 + $0x50] ss:$8 sps:$4 sm:$0xff]  }
 0xafa   : > { %3026 = vmatpush3.bf16.msra.mxu1 %v1886_v15  ;;  %2216 = vmatprep.mubr.bf16.mxu0 %v3611_v6  ;;  %v3245_v15 = vld [vmem:[%s3940_s11 + $0x64] ss:$8 sps:$4 sm:$0xff]  }
 0xafb   : > { %3031 = vmatprep.subr.bf16.mxu1 %v3223_v20  ;;  %2185 = vmatpush1.bf16.msra.mxu0 %v3225_v55 }
 0xafc   : > { %v3326_v5 = vpop.eup %3325  ;;  %2186 = vmatprep.subr.bf16.mxu0 %v3230_v57 }
 0xafd   : > { %v1834_v17 = vmul.f32 %v3326_v5, %v3318_v47  ;;  %v3243_v5 = vld [vmem:[%s3940_s11 + $0x60] ss:$8 sps:$4 sm:$0xff]  }
 0xaff   : > { %2187 = vmatpush1.bf16.msra.mxu0 %v3228_v58 }
 0xb00   : > { %v3328_v16 = vpop.eup %3327  ;;  %2188 = vmatprep.subr.bf16.mxu0 %v3233_v0 }
 0xb01   : > { %v1835_v18 = vmul.f32 %v3328_v16, %v3320_v62  ;;  %v3248_v16 = vld [vmem:[%s3940_s11 + $0x74] ss:$8 sps:$4 sm:$0xff]  }
 0xb03   : > { %v1837_v19 = vpack.c.bf16 %v1835_v18, %v1834_v17  ;;  %2189 = vmatpush1.bf16.msra.mxu0 %v3231_v2  ;;  %v3246_v17 = vld [vmem:[%s3940_s11 + $0x70] ss:$8 sps:$4 sm:$0xff]   ;;  %v3249_v18 = vld [vmem:[%s3942_s1 + $0x40] sm:$0xff]  }
 0xb04   : > { %2190 = vmatprep.subr.bf16.mxu0 %v3236_v3 }
 0xb05   : > { %3028 = vmatmul.mubr.msk.bf16.vlgmr.msra.gmra.mrb[32].mxu1 %vm842_vm2, %v1837_v19  ;;  %v3250_v19 = vld [vmem:[%s3942_s1] sm:$0xff]  }
 0xb06   : > { %3032 = vmatpush3.bf16.msra.mxu1 %v3223_v20  ;;  %v3251_v20 = vld [vmem:[%s3942_s1 + $0x48] sm:$0xff]  }
 0xb07   : > { %3033 = vmatprep.subr.bf16.mxu1 %v3224_v21  ;;  %2191 = vmatpush1.bf16.msra.mxu0 %v3234_v10 }
 0xb08   : > { %2192 = vmatprep.subr.bf16.mxu0 %v3239_v12 }
 0xb0a   : > { %3034 = vmatpush3.bf16.msra.mxu1 %v3224_v21  ;;  %v3252_v21 = vld [vmem:[%s3942_s1 + $0x8] sm:$0xff]  }
 0xb0b   : > { %2193 = vmatpush1.bf16.msra.mxu0 %v3237_v13  ;;  %2863 = vmatprep.subr.bf16.mxu1 %v3249_v18 }
 0xb0c   : > { %2194 = vmatprep.subr.bf16.mxu0 %v3242_v14 }
 0xb0f   : > { %2195 = vmatpush1.bf16.msra.mxu0 %v3240_v7 }
 0xb10   : > { %2196 = vmatprep.subr.bf16.mxu0 %v3245_v15 }
 0xb13   : > { %2197 = vmatpush1.bf16.msra.mxu0 %v3243_v5 }
 0xb14   : > { %2198 = vmatprep.subr.bf16.mxu0 %v3248_v16 }
 0xb17   : > { %2199 = vmatpush1.bf16.msra.mxu0 %v3246_v17 }
 0xbcc   : > { %v1878_v22 = vpop.f32.mrb[40].mxu0 }
 0xbcd   : > { %v3023_v23 = vpop.f32.mrb[41].mxu0 }
 0xbce   : > { %v1881_v24 = vpop.f32.mrb[42].mxu0  ;;  %v3254_v23 = vld [vmem:[%s3942_s1 + $0x10] sm:$0xff]  }
 0xbcf   : > { %v1932_v26 = vpack.c.bf16 %v1881_v24, %v1878_v22  ;;  %v3024_v29 = vpop.f32.mrb[43].mxu0  ;;  %v3253_v22 = vld [vmem:[%s3942_s1 + $0x50] sm:$0xff]   ;;  %v3255_v24 = vld [vmem:[%s3942_s1 + $0x58] sm:$0xff]  }
 0xbd0   : > { %v3257_v29 = vld [vmem:[%s3942_s1 + $0x60] sm:$0xff]  }
 0xbd1   : > { %3035 = vmatprep.mubr.msk.bf16.mxu1 %vm747_vm1, %v1932_v26  ;;  %v3256_v26 = vld [vmem:[%s3942_s1 + $0x18] sm:$0xff]  }
 0xbd8   : > { %v1925_v30 = vpop.f32.mrb[32].mxu1 }
 0xbd9   : > { %v3029_v31 = vpop.f32.mrb[33].mxu1 }
 0xbda   : > { %v1928_v32 = vpop.f32.mrb[34].mxu1  ;;  %v3259_v31 = vld [vmem:[%s3942_s1 + $0x68] sm:$0xff]  }
 0xbdb   : > { %v1933_v33 = vpack.c.bf16 %v1928_v32, %v1925_v30  ;;  %v3030_v34 = vpop.f32.mrb[35].mxu1  ;;  %v3258_v30 = vld [vmem:[%s3942_s1 + $0x20] sm:$0xff]  }
 0xbdd   : > { %3036 = vmatmul.mubr.msk.bf16.vlgmr.msra.gmra.mrb[20].mxu1 %vm747_vm1, %v1933_v33 }
 0xbde   : > { %2864 = vmatpush3.bf16.msra.mxu1 %v3250_v19 }
 0xbdf   : > { %2865 = vmatprep.subr.bf16.mxu1 %v3251_v20 }
 0xbe2   : > { %2866 = vmatpush3.bf16.msra.mxu1 %v3252_v21 }
 0xbe3   : > { %2867 = vmatprep.subr.bf16.mxu1 %v3253_v22 }
 0xbe6   : > { %2868 = vmatpush3.bf16.msra.mxu1 %v3254_v23 }
 0xbe7   : > { %2869 = vmatprep.subr.bf16.mxu1 %v3255_v24 }
 0xbea   : > { %2870 = vmatpush3.bf16.msra.mxu1 %v3256_v26 }
 0xbeb   : > { %2871 = vmatprep.subr.bf16.mxu1 %v3257_v29 }
 0xbee   : > { %2872 = vmatpush3.bf16.msra.mxu1 %v3258_v30 }
 0xbef   : > { %2873 = vmatprep.subr.bf16.mxu1 %v3259_v31 }
 0xcb0   : > { %v3037_v37 = vpop.f32.mrb[20].mxu1 }
 0xcb1   : > { %v1990_v38 = vpop.f32.mrb[21].mxu1  ;;  %v2012_v42 = vadd.f32 %v3037_v37, %v2009_v36 }
 0xcb2   : > { %v2010_v39 = vadd.f32 %v2009_v36, %v1990_v38  ;;  %v3038_v40 = vpop.f32.mrb[22].mxu1 }
 0xcb3   : > { %v1993_v41 = vpop.f32.mrb[23].mxu1  ;;  %v2013_v48 = vadd.f32 %v3038_v40, %v2009_v36  ;;  %v2016_v52 = vadd.f32 %v3347_v51, %v2012_v42 }
 0xcb4   : > { %v2011_v43 = vadd.f32 %v2009_v36, %v1993_v41  ;;  %v2014_v45 = vadd.f32 %v3345_v44, %v2010_v39 }
 0xcb5   : > { %v2017_v54 = vadd.f32 %v3348_v53, %v2013_v48  ;;  %v2018_v48 = vld [vmem:[%s3960_s24 + $0x4] ss:$0 sm:$0xff] }
 0xcb6   : > { %2020 = vadd.xlane.f32.xlu1 %v2014_v45  ;;  %v2015_v50 = vadd.f32 %v3346_v49, %v2011_v43 }
 0xcb8   : > { %2022 = vadd.xlane.f32.xlu0 %v2015_v50 }
 0xcba   : > { %2024 = vadd.xlane.f32.xlu1 %v2016_v52 }
 0xcbc   : > { %2026 = vadd.xlane.f32.xlu0 %v2017_v54 }
 0xd43   : > { %v2021_v60 = vpop.xlane.xlu1 %2020 }
 0xd44   : > { %v2029_v35 = vmul.f32 0.0078125, %v2021_v60 }
 0xd45   : > { %v2023_v61 = vpop.xlane.xlu0 %2022 }
 0xd46   : > { %v4213_v63 = vsub.f32 %v2014_v45, %v2029_v35  ;;  %v2030_v1 = vmul.f32 0.0078125, %v2023_v61 }
 0xd47   : > { %v2025_v4 = vpop.xlane.xlu1 %2024 }
 0xd48   : > { %v4215_v8 = vsub.f32 %v2015_v50, %v2030_v1  ;;  %v2031_v9 = vmul.f32 0.0078125, %v2025_v4  ;;  %v2037_v11 = vmul.f32 %v4213_v63, %v4213_v63 }
 0xd49   : > { %v2027_v46 = vpop.xlane.xlu0 %2026 }
 0xd4a   : > { %v4219_v47 = vsub.f32 %v2016_v52, %v2031_v9  ;;  %v2032_v59 = vmul.f32 0.0078125, %v2027_v46  ;;  %2041 = vadd.xlane.f32.xlu1 %v2037_v11  ;;  %v2038_v62 = vmul.f32 %v4215_v8, %v4215_v8  ;;  %v3260_v11 = vld [vmem:[%s3942_s1 + $0x28] sm:$0xff]   ;;  %v3261_v46 = vld [vmem:[%s3942_s1 + $0x70] sm:$0xff]  }
 0xd4b   : > { %2874 = vmatpush3.bf16.msra.mxu1 %v3260_v11 }
 0xd4c   : > { %v4223_v25 = vsub.f32 %v2017_v54, %v2032_v59  ;;  %2043 = vadd.xlane.f32.xlu0 %v2038_v62  ;;  %v2039_v27 = vmul.f32 %v4219_v47, %v4219_v47  ;;  %v2019_v54 = vld [vmem:[%s3960_s24 + $0x5] ss:$0 sm:$0xff]  ;;  %2875 = vmatprep.subr.bf16.mxu1 %v3261_v46  ;;  %v3263_v59 = vld [vmem:[%s3942_s1 + $0x78] sm:$0xff]  }
 0xd4d   : > { %v3264_v62 = vld [vmem:[%s3942_s1 + $0x38] sm:$0xff]  }
 0xd4e   : > { %2045 = vadd.xlane.f32.xlu1 %v2039_v27  ;;  %v2040_v28 = vmul.f32 %v4223_v25, %v4223_v25 }
 0xd50   : > { %2047 = vadd.xlane.f32.xlu0 %v2040_v28  ;;  %v2759_v28 = vld [vmem:[%s3960_s24 + $0x6] ss:$8 sm:$0x3] }
 0xdd7   : > { %v2042_v32 = vpop.xlane.xlu1 %2041 }
 0xdd8   : > { %v2049_v33 = vmul.f32 0.0078125, %v2042_v32 }
 0xdd9   : > { %v2044_v34 = vpop.xlane.xlu0 %2043 }
 0xdda   : > { %v2053_v36 = vadd.f32 1e-05, %v2049_v33  ;;  %v2050_v37 = vmul.f32 0.0078125, %v2044_v34 }
 0xddb   : > { %v2046_v38 = vpop.xlane.xlu1 %2045 }
 0xddc   : > { %3329 = vrsqrt.f32 %v2053_v36  ;;  %v2054_v39 = vadd.f32 1e-05, %v2050_v37  ;;  %v2051_v40 = vmul.f32 0.0078125, %v2046_v38 }
 0xddd   : > { %v2048_v41 = vpop.xlane.xlu0 %2047 }
 0xdde   : > { %3331 = vrsqrt.f32 %v2054_v39  ;;  %v2055_v42 = vadd.f32 1e-05, %v2051_v40  ;;  %v2052_v43 = vmul.f32 0.0078125, %v2048_v41 }
 0xde0   : > { %3333 = vrsqrt.f32 %v2055_v42  ;;  %v2056_v44 = vadd.f32 1e-05, %v2052_v43  ;;  %v2281_v42 = vld [vmem:[%s3960_s24 + $0x7] ss:$0 sm:$0xff] }
 0xde2   : > { %3335 = vrsqrt.f32 %v2056_v44 }
 0xde6   : > { %v3330_v45 = vpop.eup %3329 }
 0xde7   : > { %v2061_v49 = vmul.f32 %v3330_v45, %v4213_v63 }
 0xde8   : > { %v3332_v50 = vpop.eup %3331 }
 0xde9   : > { %v2062_v51 = vmul.f32 %v3332_v50, %v4215_v8  ;;  %v2065_v52 = vmul.f32 %v2061_v49, %v2018_v48 }
 0xdea   : > { %v3334_v53 = vpop.eup %3333 }
 0xdeb   : > { %v2066_v55 = vmul.f32 %v2062_v51, %v2018_v48  ;;  %v4256_v57 = vadd.f32 %v2065_v52, %v2019_v54  ;;  %v2063_v60 = vmul.f32 %v3334_v53, %v4219_v47  ;;  %v3262_v47 = vld [vmem:[%s3942_s1 + $0x30] sm:$0xff]   ;;  %s4291_s1 = scalar_lea.hbm %s4366_s6, %s2804_s12 }
 0xdec   : > { %v3336_v56 = vpop.eup %3335  ;;  %2876 = vmatpush3.bf16.msra.mxu1 %v3262_v47 }
 0xded   : > { %v4258_v58 = vadd.f32 %v2066_v55, %v2019_v54  ;;  %v2064_v35 = vmul.f32 %v3336_v56, %v4223_v25  ;;  %v2067_v1 = vmul.f32 %v2063_v60, %v2018_v48  ;;  %2877 = vmatprep.subr.bf16.mxu1 %v3263_v59 }
 0xdef   : > { %v2073_v61 = vpack.c.bf16 %v4258_v58, %v4256_v57  ;;  %v2068_v63 = vmul.f32 %v2064_v35, %v2018_v48  ;;  %v4267_v8 = vadd.f32 %v2067_v1, %v2019_v54 }
 0xdf0   : > { %2878 = vmatpush3.bf16.msra.mxu1 %v3264_v62 }
 0xdf1   : > { %2217 = vmatmul.mubr.bf16.vlgmr.msra.gmra.mrb[44].mxu0 %v2073_v61  ;;  %v4265_v4 = vadd.f32 %v2068_v63, %v2019_v54 }
 0xdf2   : > { %2226 = vmatprep.mubr.bf16.mxu0 %v3611_v6  ;;  %v2094_v6 = vlaneseq }
 0xdf3   : > { %v2074_v9 = vpack.c.bf16 %v4265_v4, %v4267_v8 }
 0xdf4   : > { %v2095_v25 = vshrl.u32 %v2094_v6, 7 }
 0xdf6   : > { %v2096_v27 = vsub.s32 0, %v2095_v25  ;;  %v2100_v0 = vsub.s32 1, %v2095_v25 }
 0xdf8   : > { %v2097_v2 = vrot.slane %v2759_v28, %v2096_v27  ;;  %v2101_v3 = vrot.slane %v2759_v28, %v2100_v0 }
 0xdf9   : > { %2227 = vmatmul.mubr.bf16.gmra.mrb[48].mxu0 %v2074_v9 }
 0xec4   : > { %v2218_v10 = vpop.f32.mrb[44].mxu0 }
 0xec5   : > { %v2219_v12 = vadd.f32 %v2218_v10, %v2097_v2  ;;  %v2220_v13 = vpop.f32.mrb[45].mxu0 }
 0xec6   : > { %v2221_v14 = vadd.f32 %v2220_v13, %v2101_v3  ;;  %v2222_v7 = vpop.f32.mrb[46].mxu0 }
 0xec7   : > { %v2223_v15 = vadd.f32 %v2222_v7, %v2097_v2  ;;  %v2224_v5 = vpop.f32.mrb[47].mxu0  ;;  %v2237_v17 = vmax.f32 %v2219_v12, 0.0 }
 0xec8   : > { %v2225_v16 = vadd.f32 %v2224_v5, %v2101_v3  ;;  %v2238_v19 = vmax.f32 %v2221_v14, 0.0 }
 0xec9   : > { %v2239_v18 = vmax.f32 %v2223_v15, 0.0 }
 0xeca   : > { %v2240_v20 = vmax.f32 %v2225_v16, 0.0 }
 0xecb   : > { %v2245_v21 = vpack.c.bf16 %v2239_v18, %v2237_v17 }
 0xecc   : > { %v2246_v22 = vpack.c.bf16 %v2240_v20, %v2238_v19  ;;  %v2228_v23 = vpop.f32.mrb[48].mxu0 }
 0xecd   : > { %v2229_v24 = vadd.f32 %v2228_v23, %v2097_v2  ;;  %v2230_v26 = vpop.f32.mrb[49].mxu0  ;;  %v2431_v23 = vld [vmem:[%s3960_s24 + $0x10] ss:$0 sm:$0xff] }
 0xece   : > { %v2231_v29 = vadd.f32 %v2230_v26, %v2101_v3  ;;  %v2232_v30 = vpop.f32.mrb[50].mxu0  ;;  %2410 = vmatprep.mubr.bf16.mxu1 %v2246_v22 }
 0xecf   : > { %v2233_v31 = vadd.f32 %v2232_v30, %v2097_v2  ;;  %v2234_v32 = vpop.f32.mrb[51].mxu0  ;;  %2411 = vmatmul.mubr.bf16.vlgmr.msra.gmra.mrb[36].mxu1 %v2245_v21  ;;  %v2241_v34 = vmax.f32 %v2229_v24, 0.0 }
 0xed0   : > { %v2235_v33 = vadd.f32 %v2234_v32, %v2101_v3  ;;  %v2242_v37 = vmax.f32 %v2231_v29, 0.0  ;;  %v2432_v29 = vld [vmem:[%s3960_s24 + $0x11] ss:$0 sm:$0xff] }
 0xed1   : > { %v2243_v36 = vmax.f32 %v2233_v31, 0.0 }
 0xed2   : > { %v2244_v38 = vmax.f32 %v2235_v33, 0.0 }
 0xed3   : > { %v2247_v39 = vpack.c.bf16 %v2243_v36, %v2241_v34 }
 0xed4   : > { %v2248_v40 = vpack.c.bf16 %v2244_v38, %v2242_v37 }
 0xed6   : > { %2418 = vmatprep.mubr.bf16.mxu1 %v2248_v40 }
 0xed7   : > { %2419 = vmatmul.mubr.bf16.gmra.mrb[40].mxu1 %v2247_v39 }
 0xfa2   : > { %v2879_v41 = vpop.f32.mrb[36].mxu1 }
 0xfa3   : > { %v2880_v43 = vpop.f32.mrb[37].mxu1 }
 0xfa4   : > { %v2881_v44 = vadd.f32 %v2880_v43, %v2879_v41  ;;  %v2882_v45 = vpop.f32.mrb[38].mxu1 }
 0xfa5   : > { %v2883_v48 = vpop.f32.mrb[39].mxu1 }
 0xfa6   : > { %v2413_v49 = vadd.f32 %v2881_v44, %v2281_v42  ;;  %v2884_v50 = vadd.f32 %v2883_v48, %v2882_v45 }
 0xfa8   : > { %v2416_v51 = vadd.f32 %v2884_v50, %v2281_v42  ;;  %v2427_v52 = vadd.f32 %v2413_v49, %v4256_v57 }
 0xfaa   : > { %v2885_v53 = vpop.f32.mrb[40].mxu1  ;;  %2433 = vadd.xlane.f32.xlu1 %v2427_v52  ;;  %v2428_v54 = vadd.f32 %v2416_v51, %v4258_v58 }
 0xfab   : > { %v2886_v55 = vpop.f32.mrb[41].mxu1 }
 0xfac   : > { %v2887_v56 = vadd.f32 %v2886_v55, %v2885_v53  ;;  %v2888_v60 = vpop.f32.mrb[42].mxu1  ;;  %2435 = vadd.xlane.f32.xlu0 %v2428_v54 }
 0xfad   : > { %v2889_v35 = vpop.f32.mrb[43].mxu1 }
 0xfae   : > { %v2421_v61 = vadd.f32 %v2887_v56, %v2281_v42  ;;  %v2890_v63 = vadd.f32 %v2889_v35, %v2888_v60 }
 0xfb0   : > { %v2424_v1 = vadd.f32 %v2890_v63, %v2281_v42  ;;  %v2429_v9 = vadd.f32 %v2421_v61, %v4267_v8 }
 0xfb2   : > { %2437 = vadd.xlane.f32.xlu1 %v2429_v9  ;;  %v2430_v11 = vadd.f32 %v2424_v1, %v4265_v4 }
 0xfb4   : > { %2439 = vadd.xlane.f32.xlu0 %v2430_v11 }
0x1037   : > { %v2434_v46 = vpop.xlane.xlu1 %2433 }
0x1038   : > { %v2441_v57 = vmul.f32 0.0078125, %v2434_v46 }
0x1039   : > { %v2436_v47 = vpop.xlane.xlu0 %2435 }
0x103a   : > { %v2445_v59 = vsub.f32 %v2427_v52, %v2441_v57  ;;  %v2442_v62 = vmul.f32 0.0078125, %v2436_v47 }
0x103c   : > { %v2446_v58 = vsub.f32 %v2428_v54, %v2442_v62  ;;  %v2449_v6 = vmul.f32 %v2445_v59, %v2445_v59 }
0x103e   : > { %2453 = vadd.xlane.f32.xlu1 %v2449_v6  ;;  %v2450_v25 = vmul.f32 %v2446_v58, %v2446_v58 }
0x103f   : > { %v2438_v27 = vpop.xlane.xlu1 %2437 }
0x1040   : > { %v2443_v28 = vmul.f32 0.0078125, %v2438_v27  ;;  %2455 = vadd.xlane.f32.xlu0 %v2450_v25 }
0x1041   : > { %v2440_v0 = vpop.xlane.xlu0 %2439 }
0x1042   : > { %v2447_v2 = vsub.f32 %v2429_v9, %v2443_v28  ;;  %v2444_v3 = vmul.f32 0.0078125, %v2440_v0 }
0x1044   : > { %v2448_v8 = vsub.f32 %v2430_v11, %v2444_v3  ;;  %v2451_v10 = vmul.f32 %v2447_v2, %v2447_v2 }
0x1046   : > { %2457 = vadd.xlane.f32.xlu1 %v2451_v10  ;;  %v2452_v4 = vmul.f32 %v2448_v8, %v2448_v8 }
0x1048   : > { %2459 = vadd.xlane.f32.xlu0 %v2452_v4 }
0x10cb   : > { %v2454_v12 = vpop.xlane.xlu1 %2453 }
0x10cc   : > { %v2461_v13 = vmul.f32 0.0078125, %v2454_v12 }
0x10cd   : > { %v2456_v14 = vpop.xlane.xlu0 %2455 }
0x10ce   : > { %v2465_v7 = vadd.f32 1e-05, %v2461_v13  ;;  %v2462_v15 = vmul.f32 0.0078125, %v2456_v14 }
0x10d0   : > { %3337 = vrsqrt.f32 %v2465_v7  ;;  %v2466_v5 = vadd.f32 1e-05, %v2462_v15 }
0x10d2   : > { %3339 = vrsqrt.f32 %v2466_v5 }
0x10d3   : > { %v2458_v16 = vpop.xlane.xlu1 %2457 }
0x10d4   : > { %v2463_v17 = vmul.f32 0.0078125, %v2458_v16 }
0x10d5   : > { %v2460_v18 = vpop.xlane.xlu0 %2459 }
0x10d6   : > { %v2467_v19 = vadd.f32 1e-05, %v2463_v17  ;;  %v2464_v20 = vmul.f32 0.0078125, %v2460_v18 }
0x10d8   : > { %3341 = vrsqrt.f32 %v2467_v19  ;;  %v2468_v21 = vadd.f32 1e-05, %v2464_v20 }
0x10da   : > { %v3338_v22 = vpop.eup %3337  ;;  %3343 = vrsqrt.f32 %v2468_v21 }
0x10db   : > { %v2473_v24 = vmul.f32 %v3338_v22, %v2445_v59 }
0x10dc   : > { %v3340_v26 = vpop.eup %3339 }
0x10dd   : > { %v2477_v30 = vmul.f32 %v2473_v24, %v2431_v23  ;;  %v2474_v31 = vmul.f32 %v3340_v26, %v2446_v58 }
0x10df   : > { %v2481_v32 = vadd.f32 %v2477_v30, %v2432_v29  ;;  %v2478_v33 = vmul.f32 %v2474_v31, %v2431_v23 }
0x10e1   : > { %2485 = vst [vmem:[%s3962_s17] sm:$0xff] %v2481_v32  ;;  %v2482_v34 = vadd.f32 %v2478_v33, %v2432_v29 }
0x10e2   : > { %v3342_v36 = vpop.eup %3341 }
0x10e3   : > { %2486 = vst [vmem:[%s3962_s17 + $0x8] sm:$0xff] %v2482_v34  ;;  %v2475_v37 = vmul.f32 %v3342_v36, %v2447_v2 }
0x10e4   : > { %v3344_v38 = vpop.eup %3343 }
0x10e5   : > { %v2479_v39 = vmul.f32 %v2475_v37, %v2431_v23  ;;  %v2476_v40 = vmul.f32 %v3344_v38, %v2448_v8 }
0x10e7   : > { %v2483_v41 = vadd.f32 %v2479_v39, %v2432_v29  ;;  %v2480_v42 = vmul.f32 %v2476_v40, %v2431_v23 }
0x10e9   : > { %2487 = vst [vmem:[%s3962_s17 + $0x10] sm:$0xff] %v2483_v41  ;;  %v2484_v43 = vadd.f32 %v2480_v42, %v2432_v29 }
0x10eb   : > { %2488 = vst [vmem:[%s3962_s17 + $0x18] sm:$0xff] %v2484_v43 }
0x10ec   : > { %3482 = shalt.err (!%p3479_p12)
}
0x10ed   : > { %s3483_s8 = scalar_lea.hbm %s4291_s1, 512  ;;  %s3487_s23 = scalar_lea.hbm %s4366_s6, 1024 }
0x10ee   : > { %p3484_p3 = scmp.ne.s32.totalorder %s4291_s1, %s3483_s8  ;;  %p3488_p4 = scmp.lt.u32.totalorder %s4291_s1, %s4366_s6 }
0x10ef   : > { %p3489_p9 = scmp.lt.u32.totalorder %s3487_s23, %s3483_s8  ;;  %p3491_p1 = scmp.lt.u32.totalorder %s3483_s8, %s4291_s1 }
0x10f0   : > { %p3485_p6 = pnand %p3484_p3, %p4406_p2 }
0x10f1   : > { %p3490_p0 = por %p3489_p9, %p3488_p4 }
0x10f2   : > { %p3486_p8 = pneg %p3485_p6 }
0x10f3   : > { %p3492_p13 = por %p3491_p1, %p3490_p0 }
0x10f5   : > { %p3493_p7 = pnand %p3492_p13, %p3486_p8 }
0x10f7   : > { %3496 = shalt.err (!%p3493_p7)
}
0x10f8   : > { %s3618_s7 = smov 128   ;;  %s3619_s24 = smov 8  }
0x10f9   : > { %3062 = dma.vmem_to_hbm [thread:$0]  (%p4406_p2), %s4293_s18, 512, %s4291_s1, %s4299_s26, %s3618_s7, %s3618_s7, %s3619_s24  }
0x10fa PF: > { %s4407_s17 = sld [smem:[#allocation19_spill]]  ;;  %s4408_s27 = sld [smem:[#allocation15_spill]] }
0x10fb   : > { %s4409_s10 = sld [smem:[#allocation24_spill]] }
0x1100   : > { %p3082_p10 = scmp.ge.s32.totalorder %s4407_s17, 2  ;;  %s2519_s30 = sand.u32 1, %s4408_s27  }
0x1101   : > { %p4410_p5 = scmp.ne.s32.totalorder %s4409_s10, 0  ;;  %s2520_s12 = scalar_lea.sflag [#allocation4], %s2519_s30 }
0x1103   : > { %p3078_p11 = pnand %p3082_p10, %p4410_p5 }
0x1105   : > { %3554 = dma.done.wait (!%p3078_p11), %s2520_s12, 512  }
0x1106   : > { %3556 = vsyncadd (!%p3078_p11), %s2520_s12, 4294966784  ;;  %s28_s7 = sadd.s32 1, %s4407_s17   ;;  %s4411_s11 = sld [smem:[#allocation16_spill]] }
0x1107   : > { %p25_p12 = scmp.ge.s32.totalorder %s28_s7, 6   ;;  %s4412_s23 = sld [smem:[#allocation23_spill]] }
0x1108   : > { %s4413_s20 = sld [smem:[#allocation17_spill]]  ;;  %s4414_s26 = sld [smem:[#allocation22_spill]] }
0x1109   : > { %s4415_s28 = sld [smem:[#allocation18_spill]]  ;;  %s4416_s18 = sld [smem:[#allocation20_spill]] }
0x110a   : > { %s4417_s30 = sld [smem:[#allocation21_spill]]  ;;  %s4418_s21 = smov %s3563_s22 }
0x110b   : > { %s4420_s24 = smov %s3575_s25  ;;  %s4422_s27 = smov %s3591_s29 }
0x110c   : > { %s4419_s22 = smov %s4411_s11  ;;  %27 = sbr.rel (!%p25_p12) target bundleno = 16 (0x10), region = 137 }
0x110e   : > { %s4421_s25 = smov %s4413_s20 }
0x110f   : > { %s4423_s29 = smov %s4416_s18 }
0x1113   :  { %2525 = vsyncpa [#allocation3], 1 }
0x1114   :  { %2527 = vsyncpa [#allocation3 + $0x1], 1 }
0x1115   :  { %2528 = vsyncpa [#allocation6], 1 }
0x1116   :  { %2530 = vsyncpa [#allocation6 + $0x1], 1 }
0x1117   :  { %2531 = vsyncpa [#allocation9], 1 }
0x1118   :  { %2533 = vsyncpa [#allocation9 + $0x1], 1 }
0x1119   :  { %2534 = vsyncpa [#allocation4], 1 }
0x111a   :  { %2536 = vsyncpa [#allocation4 + $0x1], 1 }

</bundles_post_ra>
